<compile_context>
chip_gen: v7x
topology: tpu7x:2x2x1
jax: 0.10.0
libtpu: 0.0.40
codegen_flags: <defaults>
</compile_context>

<pallas_src>
import functools
import math

import jax
import jax.numpy as jnp
from jax.experimental import pallas as pl
from jax.experimental.pallas import tpu as pltpu


NUM_QUERIES = 20     # fixed by the module's forward contract
QUERY_HIDDEN = 256   # hidden width of query_proj (unused by the fused kernel)


def _angular_q_kernel(f_ref, wv_ref, bv_ref, wo_ref, bo_ref, o_ref):
    """out = (features @ Wv + bv) @ Wo + bo for one batch tile."""
    f = f_ref[...].astype(jnp.float32)                               # (tb, d)
    v = jnp.dot(f, wv_ref[...], preferred_element_type=jnp.float32) + bv_ref[...]
    out = jnp.dot(v, wo_ref[...], preferred_element_type=jnp.float32) + bo_ref[...]
    o_ref[...] = out.astype(o_ref.dtype)


def _pick_block_b(batch, target=256):
    """Batch tile: (8,128)-legal, close to `target`, >=2 grid steps when possible.

    v7x has 2 TensorCores per chip sharded via dimension_semantics=("parallel",);
    a single grid step would leave one core idle, so split whenever B >= 16.
    """
    b8 = -(-batch // 8) * 8                    # batch rounded up to sublane multiple
    n_tiles = -(-b8 // target)                 # tiles needed at the target size
    if b8 >= 16:
        n_tiles = max(n_tiles, 2)
    bb = -(-(-(-b8 // n_tiles)) // 8) * 8      # ceil(b8 / n_tiles), rounded up to 8
    return max(8, min(bb, b8))


@functools.partial(jax.jit, static_argnames=("block_b",))
def angular_q_encoder(queries, features, params, *, block_b=None):
    """Fused Pallas forward of AngularQEncoder.

    queries:  (B, 20, q_init_dim)  -- part of the module contract; numerically
              dead (softmax over a singleton axis), so never sent to the TPU
              kernel (see header comment).
    features: (B, d_query)
    params:   (wq1, bq1, wq2, bq2, wk, bk, wv, bv, wo, bo); weights stored as
              (in_features, out_features), biases as (1, out_features).
    returns:  (B, d_query)
    """
    wq1, bq1, wq2, bq2, wk, bk, wv, bv, wo, bo = params
    del wq1, bq1, wq2, bq2, wk, bk                 # dead path (see header comment)

    B, num_q, _ = queries.shape
    d_query = wo.shape[1]
    assert num_q == NUM_QUERIES
    assert features.shape == (B, d_query)
    assert wv.shape == (d_query, d_query) and wo.shape == (d_query, d_query)

    if block_b is None:
        block_b = _pick_block_b(B)

    # Pad the batch to a multiple of the tile (cheap XLA op); padded rows are
    # computed on garbage/zeros and sliced off below.
    B_pad = -(-B // block_b) * block_b
    f = features if B_pad == B else jnp.pad(features, ((0, B_pad - B), (0, 0)))

    grid = (B_pad // block_b,)
    row = lambda i: (i, 0)       # batch-tiled arrays
    full = lambda i: (0, 0)      # weights / biases: same block every grid step

    flops = 4 * B_pad * d_query * d_query                      # two matmuls
    bytes_accessed = 4 * (2 * B_pad * d_query + 2 * d_query * d_query + 2 * d_query)
    cost = pl.CostEstimate(flops=flops, transcendentals=0,
                           bytes_accessed=bytes_accessed)

    out = pl.pallas_call(
        _angular_q_kernel,
        out_shape=jax.ShapeDtypeStruct((B_pad, d_query), features.dtype),
        grid_spec=pl.GridSpec(
            grid=grid,
            in_specs=[
                pl.BlockSpec((block_b, d_query), row),          # features
                pl.BlockSpec((d_query, d_query), full),         # wv
                pl.BlockSpec((1, d_query), full),               # bv
                pl.BlockSpec((d_query, d_query), full),         # wo
                pl.BlockSpec((1, d_query), full),               # bo
            ],
            out_specs=pl.BlockSpec((block_b, d_query), row),
        ),
        compiler_params=pltpu.CompilerParams(
            dimension_semantics=("parallel",),
            vmem_limit_bytes=32 * 1024 * 1024,
        ),
        cost_estimate=cost,
    )(f, wv, bv, wo, bo)

    return out if B_pad == B else out[:B]


def init_params(key, q_init_dim=2, d_query=512, hidden=QUERY_HIDDEN,
                dtype=jnp.float32):
    """Kaiming-uniform init mirroring torch.nn.Linear defaults."""
    ks = jax.random.split(key, 10)

    def linear(kw, kb, fan_in, fan_out):
        bound = 1.0 / math.sqrt(fan_in)
        w = jax.random.uniform(kw, (fan_in, fan_out), dtype, -bound, bound)
        b = jax.random.uniform(kb, (1, fan_out), dtype, -bound, bound)
        return w, b

    wq1, bq1 = linear(ks[0], ks[1], q_init_dim, hidden)
    wq2, bq2 = linear(ks[2], ks[3], hidden, d_query)
    wk, bk = linear(ks[4], ks[5], d_query, d_query)
    wv, bv = linear(ks[6], ks[7], d_query, d_query)
    wo, bo = linear(ks[8], ks[9], d_query, d_query)
    return (wq1, bq1, wq2, bq2, wk, bk, wv, bv, wo, bo)


def reference(queries, features, params):
    """Pure-JAX transcription of AngularQEncoder.forward (full, unsimplified)."""
    wq1, bq1, wq2, bq2, wk, bk, wv, bv, wo, bo = params
    hp = jax.lax.Precision.HIGHEST
    d_query = wo.shape[1]
    feat = features[:, None, :]                                       # (B, 1, d)
    h = jnp.maximum(jnp.einsum("bqi,ih->bqh", queries, wq1, precision=hp) + bq1, 0.0)
    Q = jnp.einsum("bqh,hd->bqd", h, wq2, precision=hp) + bq2         # (B, 20, d)
    K = jnp.einsum("bsd,de->bse", feat, wk, precision=hp) + bk        # (B, 1, d)
    V = jnp.einsum("bsd,de->bse", feat, wv, precision=hp) + bv        # (B, 1, d)
    scores = jnp.einsum("bqd,bsd->bqs", Q, K, precision=hp) / math.sqrt(d_query)
    weights = jax.nn.softmax(scores, axis=-1)                         # (B, 20, 1)
    attended = jnp.einsum("bqs,bsd->bqd", weights, V, precision=hp)
    out = jnp.einsum("bd,de->be", attended.mean(axis=1), wo, precision=hp) + bo
    return out


if __name__ == "__main__":
    key = jax.random.PRNGKey(0)
    batch, num_q, q_init_dim, d_query = 12, NUM_QUERIES, 2, 512

    kq, kf, kp = jax.random.split(key, 3)
    queries = jax.random.normal(kq, (batch, num_q, q_init_dim), jnp.float32)
    features = jax.random.normal(kf, (batch, d_query), jnp.float32)
    params = init_params(kp, q_init_dim, d_query)

    # batch=12 exercises wrapper-side padding (12 -> 16) and a 2-step grid
    # (block_b=8), i.e. both v7x TensorCores get a tile.
    out = angular_q_encoder(queries, features, params)
    out = jax.block_until_ready(out)

    ref = reference(queries, features, params)
    assert out.shape == (batch, d_query)
    assert jnp.allclose(out, ref, atol=2e-3, rtol=2e-3), "mismatch vs reference"

    print("KERNEL_OK")
</pallas_src>

<mosaic_0001>
module attributes {stable_mosaic.version = 11 : i64} {
  func.func @_angular_q_kernel(%arg0: i32, %arg1: memref<8x512xf32, #tpu.memory_space<vmem>>, %arg2: memref<512x512xf32, #tpu.memory_space<vmem>>, %arg3: memref<1x512xf32, #tpu.memory_space<vmem>>, %arg4: memref<512x512xf32, #tpu.memory_space<vmem>>, %arg5: memref<1x512xf32, #tpu.memory_space<vmem>>, %arg6: memref<8x512xf32, #tpu.memory_space<vmem>>) attributes {dimension_semantics = [#tpu.dimension_semantics<parallel>], iteration_bounds = array<i64: 2>, scalar_prefetch = 0 : i64, scratch_operands = 0 : i64, tpu.core_type = #tpu.core_type<tc>, window_params = [{transform_indices = @transform_0, window_bounds = array<i64: 8, 512>}, {pipeline_mode = #tpu.pipeline_mode<synchronous>, transform_indices = @transform_1, window_bounds = array<i64: 512, 512>}, {pipeline_mode = #tpu.pipeline_mode<synchronous>, transform_indices = @transform_2, window_bounds = array<i64: 1, 512>}, {pipeline_mode = #tpu.pipeline_mode<synchronous>, transform_indices = @transform_3, window_bounds = array<i64: 512, 512>}, {pipeline_mode = #tpu.pipeline_mode<synchronous>, transform_indices = @transform_4, window_bounds = array<i64: 1, 512>}, {transform_indices = @transform_5, window_bounds = array<i64: 8, 512>}]} {
    %c0 = arith.constant 0 : index
    %c0_0 = arith.constant 0 : index
    %0 = vector.load %arg1[%c0, %c0_0] : memref<8x512xf32, #tpu.memory_space<vmem>>, vector<8x512xf32>
    %c0_1 = arith.constant 0 : index
    %c0_2 = arith.constant 0 : index
    %1 = vector.load %arg2[%c0_1, %c0_2] : memref<512x512xf32, #tpu.memory_space<vmem>>, vector<512x512xf32>
    %cst = arith.constant dense<0.000000e+00> : vector<8x512xf32>
    %2 = tpu.matmul %0, %1, %cst {dimension_numbers = #tpu.dot_dimension_numbers<[1], [0], [0], [1], [0, 0, 1, 1], [], []>} : vector<8x512xf32>, vector<512x512xf32>, vector<8x512xf32> -> vector<8x512xf32>
    %c0_3 = arith.constant 0 : index
    %c0_4 = arith.constant 0 : index
    %3 = vector.load %arg3[%c0_3, %c0_4] : memref<1x512xf32, #tpu.memory_space<vmem>>, vector<1x512xf32>
    %4 = vector.broadcast %3 : vector<1x512xf32> to vector<8x512xf32>
    %5 = arith.addf %2, %4 : vector<8x512xf32>
    %c0_5 = arith.constant 0 : index
    %c0_6 = arith.constant 0 : index
    %6 = vector.load %arg4[%c0_5, %c0_6] : memref<512x512xf32, #tpu.memory_space<vmem>>, vector<512x512xf32>
    %cst_7 = arith.constant dense<0.000000e+00> : vector<8x512xf32>
    %7 = tpu.matmul %5, %6, %cst_7 {dimension_numbers = #tpu.dot_dimension_numbers<[1], [0], [0], [1], [0, 0, 1, 1], [], []>} : vector<8x512xf32>, vector<512x512xf32>, vector<8x512xf32> -> vector<8x512xf32>
    %c0_8 = arith.constant 0 : index
    %c0_9 = arith.constant 0 : index
    %8 = vector.load %arg5[%c0_8, %c0_9] : memref<1x512xf32, #tpu.memory_space<vmem>>, vector<1x512xf32>
    %9 = vector.broadcast %8 : vector<1x512xf32> to vector<8x512xf32>
    %10 = arith.addf %7, %9 : vector<8x512xf32>
    %c0_10 = arith.constant 0 : index
    %c0_11 = arith.constant 0 : index
    %11 = vector.load %arg6[%c0_10, %c0_11] : memref<8x512xf32, #tpu.memory_space<vmem>>, vector<8x512xf32>
    tpu.vector_store %arg6[%c0_10, %c0_11], %10 {strides = array<i32>} : memref<8x512xf32, #tpu.memory_space<vmem>>, vector<8x512xf32>,
    return
  }
  func.func @transform_0(%arg0: i32) -> (i32, i32) {
    %c0_i32 = arith.constant 0 : i32
    %c0_i32_0 = arith.constant 0 : i32
    return %arg0, %c0_i32 : i32, i32
  }
  func.func @transform_1(%arg0: i32) -> (i32, i32) {
    %c0_i32 = arith.constant 0 : i32
    %c0_i32_0 = arith.constant 0 : i32
    %c0_i32_1 = arith.constant 0 : i32
    return %c0_i32, %c0_i32_0 : i32, i32
  }
  func.func @transform_2(%arg0: i32) -> (i32, i32) {
    %c0_i32 = arith.constant 0 : i32
    %c0_i32_0 = arith.constant 0 : i32
    %c0_i32_1 = arith.constant 0 : i32
    return %c0_i32, %c0_i32_0 : i32, i32
  }
  func.func @transform_3(%arg0: i32) -> (i32, i32) {
    %c0_i32 = arith.constant 0 : i32
    %c0_i32_0 = arith.constant 0 : i32
    %c0_i32_1 = arith.constant 0 : i32
    return %c0_i32, %c0_i32_0 : i32, i32
  }
  func.func @transform_4(%arg0: i32) -> (i32, i32) {
    %c0_i32 = arith.constant 0 : i32
    %c0_i32_0 = arith.constant 0 : i32
    %c0_i32_1 = arith.constant 0 : i32
    return %c0_i32, %c0_i32_0 : i32, i32
  }
  func.func @transform_5(%arg0: i32) -> (i32, i32) {
    %c0_i32 = arith.constant 0 : i32
    %c0_i32_0 = arith.constant 0 : i32
    return %arg0, %c0_i32 : i32, i32
  }
}

</mosaic_0001>

<bundles_post_ra>
// kernel: angular_q_encoder.1
= control target key start
LH: loop header
LB: loop body
LE: loop exit
PB: predicated region body
PF: predicated region fallthrough
CT: control target
= control target key end

     0   :  { %10 = vsyncpa [#allocation3], 0  ;;  %s2468_s0 = inlined_call_operand.vmem [shape: f32[16,512], index: 0, kind: input, shape index: {}]   ;;  %s2469_s1 = inlined_call_operand.hbm [shape: f32[512,512], index: 1, kind: input, shape index: {}]   ;;  %s2470_s2 = inlined_call_operand.vmem [shape: f32[1,512], index: 2, kind: input, shape index: {}]   ;;  %s2471_s3 = inlined_call_operand.hbm [shape: f32[512,512], index: 3, kind: input, shape index: {}]   ;;  %s2472_s4 = inlined_call_operand.vmem [shape: f32[1,512], index: 4, kind: input, shape index: {}]   ;;  %s2473_s5 = inlined_call_operand.hbm [shape: f32[16,512], index: 5, kind: output, shape index: {}]  }
   0x1   :  { %11 = vsyncpa [#allocation6], 0 }
   0x2   :  { %12 = vsyncpa [#allocation4], 0 }
   0x3   :  { %14 = vsyncpa [#allocation4 + $0x1], 0  ;;  %s2252_s18 = smov 0   ;;  %s2254_s19 = smov 0  }
   0x4   :  { %s2256_s20 = smov 0   ;;  %s2258_s21 = smov 0  }
   0x5 LB: > { %s2273_s22 = sadd.s32 4294967295, %s2215_s21   ;;  %s1481_s23 = sadd.s32 4294967294, %s2215_s21   ;;  %s2215_s21 = sphi %s2258_s21, %s2491_s21   ;;  %s2211_s20 = sphi %s2256_s20, %s2490_s20   ;;  %s2207_s19 = sphi %s2254_s19, %s2489_s19   ;;  %s2203_s18 = sphi %s2252_s18, %s2488_s18  }
   0x6   : > { %s2277_s24 = sadd.s32 1, %s2215_s21   ;;  %s137_s25 = sadd.s32 1, %s2211_s20 }
   0x7   : > { %s134_s26 = ssub.s32 %s2215_s21, %s2277_s24  ;;  %p147_p0 = scmp.ne.s32.totalorder %s2211_s20, %s2207_s19 }
   0x8   : > { %p135_p1 = scmp.eq.s32.totalorder %s134_s26, 0  ;;  %p148_p2 = scmp.eq.s32.totalorder %s2273_s22, 1 }
   0x9   : > { %p153_p3 = scmp.ne.s32.totalorder %s2207_s19, %s2203_s18  ;;  %p154_p4 = scmp.eq.s32.totalorder %s1481_s23, 1 }
   0xa   : > { %s2288_s27 = scalar_select %p135_p1, %s2211_s20, %s137_s25  }
   0xb   : > { %p2290_p5 = por %p148_p2, %p147_p0  ;;  %p2294_p6 = por %p154_p4, %p153_p3 }
   0xc   : > { %p1482_p7 = scmp.ge.s32.totalorder %s2215_s21, 1  ;;  %p161_p8 = scmp.lt.s32.totalorder %s2215_s21, 3 }
   0xd   : > { %s2477_s28 = scalar_select %p2290_p5, 1, 0 }
   0xe   : > { %s2478_s29 = scalar_select %p2294_p6, 1, 0 }
   0xf   : > { %p2474_p9 = scmp.eq.s32.totalorder %s2273_s22, 0  ;;  %p2301_p10 = pnand %p1482_p7, %p161_p8 }
  0x10   : > { %s2217_s6 = smov [#allocation2]   ;;  %s2218_s9 = smov [#allocation5]  }
  0x11   : > { %s2479_s30 = scalar_select %p2301_p10, 1, 0 }
  0x12   : > { %s173_s7 = sshll.u32 %s2217_s6, 4  ;;  %p2037_p11 = pneg %p2301_p10  ;;  %s174_s7 = int_to_ptr.vmem [resolvable:$true] %s173_s7 }
  0x13   : > { %s189_s10 = sshll.u32 %s2218_s9, 4  ;;  %s2089_s13 = scalar_lea.hbm %s2469_s1, 32768  ;;  %s2313_s10 = int_to_ptr.vmem [resolvable:$true] %s189_s10 }
  0x14   : > { %p2309_p12 = pnand %p2474_p9, %p2037_p11  ;;  %p2090_p13 = scmp.ne.s32.totalorder %s2469_s1, %s2089_s13 }
  0x15   : > { %p2096_p3 = scmp.lt.u32.totalorder %s2089_s13, %s2469_s1 }
  0x16   : > { %p2091_p0 = pneg %p2309_p12 }
  0x18   : > { %p2092_p1 = pnand %p2091_p0, %p2090_p13 }
  0x1a   : > { %p2093_p2 = pneg %p2092_p1 }
  0x1c   : > { %p2098_p4 = pnand %p2096_p3, %p2093_p2 }
  0x1e   : > { %2101 = shalt.err (!%p2098_p4)
}
  0x1f   : > { %s2102_s23 = scalar_lea.vmem %s174_s7, 32768  ;;  %p2110_p9 = scmp.lt.s32.totalorder %s174_s7, %s174_s7 }
  0x20   : > { %p2103_p7 = scmp.ne.s32.totalorder %s174_s7, %s2102_s23  ;;  %p2111_p6 = scmp.lt.s32.totalorder %s2102_s23, %s2102_s23 }
  0x22   : > { %p2105_p8 = pnand %p2103_p7, %p2091_p0  ;;  %p2112_p5 = por %p2111_p6, %p2110_p9 }
  0x24   : > { %p2106_p11 = pneg %p2105_p8 }
  0x26   : > { %p2113_p10 = pnand %p2112_p5, %p2106_p11 }
  0x28   : > { %2116 = shalt.err (!%p2113_p10)
}
  0x29   : > { %s2219_s25 = smov 512   ;;  %s2220_s26 = smov 32  }
  0x2a   : > { %2040 = dma.hbm_to_vmem [thread:$0]  (!%p2309_p12), %s2469_s1, 32768, %s174_s7, [#allocation3], %s2219_s25, %s2219_s25, %s2220_s26  }
  0x2b   : > { %s2117_s13 = scalar_lea.hbm %s2471_s3, 32768 }
  0x2c   : > { %p2118_p13 = scmp.ne.s32.totalorder %s2471_s3, %s2117_s13  ;;  %p2124_p9 = scmp.lt.u32.totalorder %s2117_s13, %s2471_s3 }
  0x2e   : > { %p2120_p5 = pnand %p2118_p13, %p2091_p0 }
  0x30   : > { %p2121_p6 = pneg %p2120_p5 }
  0x32   : > { %p2126_p10 = pnand %p2124_p9, %p2121_p6 }
  0x34   : > { %2129 = shalt.err (!%p2126_p10)
}
  0x35   : > { %s2130_s7 = scalar_lea.vmem %s2313_s10, 32768  ;;  %p2138_p4 = scmp.lt.s32.totalorder %s2313_s10, %s2313_s10 }
  0x36   : > { %p2131_p1 = scmp.ne.s32.totalorder %s2313_s10, %s2130_s7  ;;  %p2139_p7 = scmp.lt.s32.totalorder %s2130_s7, %s2130_s7 }
  0x38   : > { %p2133_p2 = pnand %p2131_p1, %p2091_p0  ;;  %p2140_p8 = por %p2139_p7, %p2138_p4 }
  0x3a   : > { %p2134_p3 = pneg %p2133_p2 }
  0x3c   : > { %p2141_p11 = pnand %p2140_p8, %p2134_p3 }
  0x3e   : > { %2144 = shalt.err (!%p2141_p11)
}
  0x3f   : > { %2043 = dma.hbm_to_vmem [thread:$0]  (!%p2309_p12), %s2471_s3, 32768, %s2313_s10, [#allocation6], %s2219_s25, %s2219_s25, %s2220_s26  }
  0x40   : > { %p2481_p13 = scmp.ne.s32.totalorder %s2479_s30, 0 }
  0x41   : > { %p2482_p5 = scmp.eq.s32.totalorder (!%p2481_p13), %s2273_s22, 0 }
  0x42   : > { %216 = sbr.rel (%p2481_p13) target bundleno = 719 (0x2cf), region = 40 }
  0x49   : > { %2190 = dma.done.wait (%p2482_p5), [#allocation3], 32768   ;;  %p2483_p0 = pmov %p2482_p5 }
  0x4b   : > { %2192 = vsyncadd (%p2483_p0), [#allocation3], 4294934528  ;;  %p2484_p6 = pmov %p2483_p0 }
  0x4c   : > { %p2485_p9 = pmov %p2483_p0 }
  0x4d   : > { %2194 = dma.done.wait (%p2484_p6), [#allocation6], 32768  }
  0x4e   : > { %2196 = vsyncadd (%p2485_p9), [#allocation6], 4294934528  ;;  %v258_v0 = vld [vmem:[#allocation2 + $0x8] sm:$0xff]  ;;  %v260_v2 = vld [vmem:[#allocation2 + $0x18] sm:$0xff]  ;;  %p248_p12 = scmp.lt.s32.totalorder %s2273_s22, 1  ;;  %s245_s12 = sand.u32 1, %s2207_s19  }
  0x4f   : > { %v262_v1 = vld [vmem:[#allocation2 + $0x28] sm:$0xff]  ;;  %v264_v4 = vld [vmem:[#allocation2 + $0x38] sm:$0xff]  ;;  %v257_v5 = vld [vmem:[#allocation2] sm:$0xff]  ;;  %s1489_s13 = sshll.u32 %s245_s12, 5  ;;  %s1498_s16 = sshll.u32 %s2273_s22, 9 }
  0x50   : > { %v1499_v3 = vpack.c.bf16 %v262_v1, %v258_v0  ;;  %v261_v6 = vld [vmem:[#allocation2 + $0x20] sm:$0xff]  ;;  %v1627_v7 = vpack.c.bf16 %v264_v4, %v260_v2  ;;  %v259_v9 = vld [vmem:[#allocation2 + $0x10] sm:$0xff]  ;;  %v266_v11 = vld [vmem:[#allocation2 + $0x48] sm:$0xff]  ;;  %s2376_s30 = scalar_select %p248_p12, %s2273_s22, 1 }
  0x51   : > { %v1501_v8 = vpack.c.bf16 %v261_v6, %v257_v5  ;;  %v263_v10 = vld [vmem:[#allocation2 + $0x30] sm:$0xff]  ;;  %v270_v13 = vld [vmem:[#allocation2 + $0x68] sm:$0xff]  ;;  %v268_v14 = vld [vmem:[#allocation2 + $0x58] sm:$0xff]  ;;  %s247_s17 = scalar_lea.vmem [#allocation7], %s1489_s13  ;;  %s1386_s22 = scalar_lea.sflag [#allocation4], %s245_s12 }
  0x52   : > { %1500 = vmatprep.subr.bf16.mxu0 %v1499_v3  ;;  %v1629_v12 = vpack.c.bf16 %v263_v10, %v259_v9  ;;  %v272_v15 = vld [vmem:[#allocation2 + $0x78] sm:$0xff]  ;;  %1628 = vmatprep.subr.bf16.mxu1 %v1627_v7  ;;  %v1503_v16 = vpack.c.bf16 %v270_v13, %v266_v11  ;;  %v265_v18 = vld [vmem:[#allocation2 + $0x40] sm:$0xff]  ;;  %v267_v20 = vld [vmem:[#allocation2 + $0x50] sm:$0xff]  ;;  %s1497_s8 = sshll.u32 %s2376_s30, 5  ;;  %s1400_s7 = sshll.u32 %s247_s17, 4  ;;  %s2428_s7 = int_to_ptr.vmem [resolvable:$true] %s1400_s7 }
  0x53   : > { %1502 = vmatpush1.bf16.msra.mxu0 %v1501_v8  ;;  %v1631_v17 = vpack.c.bf16 %v272_v15, %v268_v14  ;;  %v269_v19 = vld [vmem:[#allocation2 + $0x60] sm:$0xff]  ;;  %v271_v22 = vld [vmem:[#allocation2 + $0x70] sm:$0xff]  ;;  %v274_v23 = vld [vmem:[#allocation2 + $0x88] sm:$0xff]  ;;  %s2382_s26 = scalar_lea.vmem %s2468_s0, %s1497_s8  ;;  %s2426_s30 = scalar_lea.hbm %s2473_s5, %s1498_s16 }
  0x54   : > { %1630 = vmatpush1.bf16.msra.mxu1 %v1629_v12  ;;  %v1505_v21 = vpack.c.bf16 %v269_v19, %v265_v18  ;;  %v278_v24 = vld [vmem:[#allocation2 + $0xa8] sm:$0xff]  ;;  %1504 = vmatprep.subr.bf16.mxu0 %v1503_v16  ;;  %v1633_v25 = vpack.c.bf16 %v271_v22, %v267_v20  ;;  %v276_v27 = vld [vmem:[#allocation2 + $0x98] sm:$0xff]  ;;  %v273_v29 = vld [vmem:[#allocation2 + $0x80] sm:$0xff]  ;;  %s2145_s8 = scalar_lea.vmem %s2428_s7, 512  ;;  %p2486_p1 = scmp.ne.s32.totalorder %s2477_s28, 0 }
  0x55   : > { %1632 = vmatprep.subr.bf16.mxu1 %v1631_v17  ;;  %v1507_v26 = vpack.c.bf16 %v278_v24, %v274_v23  ;;  %v280_v28 = vld [vmem:[#allocation2 + $0xb8] sm:$0xff]  ;;  %v277_v31 = vld [vmem:[#allocation2 + $0xa0] sm:$0xff]  ;;  %v275_v32 = vld [vmem:[#allocation2 + $0x90] sm:$0xff]  ;;  %p2146_p10 = scmp.ne.s32.totalorder %s2428_s7, %s2145_s8  ;;  %s2221_s10 = smov [#allocation7]  }
  0x56   : > { %v1635_v30 = vpack.c.bf16 %v280_v28, %v276_v27  ;;  %v279_v33 = vld [vmem:[#allocation2 + $0xb0] sm:$0xff]  ;;  %v1509_v34 = vpack.c.bf16 %v277_v31, %v273_v29  ;;  %v282_v35 = vld [vmem:[#allocation2 + $0xc8] sm:$0xff]  ;;  %v284_v37 = vld [vmem:[#allocation2 + $0xd8] sm:$0xff]  ;;  %s2149_s25 = sshll.u32 %s2221_s10, 4  ;;  %s2150_s25 = int_to_ptr.vmem [resolvable:$false] %s2149_s25 }
  0x57   : > { %1506 = vmatpush1.bf16.msra.mxu0 %v1505_v21  ;;  %v286_v36 = vld [vmem:[#allocation2 + $0xe8] sm:$0xff]  ;;  %v1637_v38 = vpack.c.bf16 %v279_v33, %v275_v32  ;;  %v288_v40 = vld [vmem:[#allocation2 + $0xf8] sm:$0xff]  ;;  %v281_v41 = vld [vmem:[#allocation2 + $0xc0] sm:$0xff]  ;;  %p2147_p2 = pnand %p2146_p10, %p2486_p1  ;;  %p2152_p4 = scmp.lt.s32.totalorder %s2428_s7, %s2150_s25 }
  0x58   : > { %1634 = vmatpush1.bf16.msra.mxu1 %v1633_v25  ;;  %1508 = vmatprep.subr.bf16.mxu0 %v1507_v26  ;;  %v1511_v39 = vpack.c.bf16 %v286_v36, %v282_v35  ;;  %v285_v42 = vld [vmem:[#allocation2 + $0xe0] sm:$0xff]  ;;  %v1639_v43 = vpack.c.bf16 %v288_v40, %v284_v37  ;;  %v283_v44 = vld [vmem:[#allocation2 + $0xd0] sm:$0xff]  ;;  %v290_v46 = vld [vmem:[#allocation2 + $0x108] sm:$0xff] }
  0x59   : > { %1636 = vmatprep.subr.bf16.mxu1 %v1635_v30  ;;  %v287_v45 = vld [vmem:[#allocation2 + $0xf0] sm:$0xff]  ;;  %v294_v47 = vld [vmem:[#allocation2 + $0x128] sm:$0xff]  ;;  %v292_v48 = vld [vmem:[#allocation2 + $0x118] sm:$0xff]  ;;  %v1513_v50 = vpack.c.bf16 %v285_v42, %v281_v41  ;;  %p2148_p3 = pneg %p2147_p2 }
  0x5a   : > { %v296_v49 = vld [vmem:[#allocation2 + $0x138] sm:$0xff]  ;;  %v1641_v51 = vpack.c.bf16 %v287_v45, %v283_v44  ;;  %v1515_v52 = vpack.c.bf16 %v294_v47, %v290_v46  ;;  %v289_v53 = vld [vmem:[#allocation2 + $0x100] sm:$0xff]  ;;  %v291_v55 = vld [vmem:[#allocation2 + $0x110] sm:$0xff] }
  0x5b   : > { %1510 = vmatpush1.bf16.msra.mxu0 %v1509_v34  ;;  %v293_v54 = vld [vmem:[#allocation2 + $0x120] sm:$0xff]  ;;  %v1643_v56 = vpack.c.bf16 %v296_v49, %v292_v48  ;;  %v295_v57 = vld [vmem:[#allocation2 + $0x130] sm:$0xff]  ;;  %v298_v58 = vld [vmem:[#allocation2 + $0x148] sm:$0xff] }
  0x5c   : > { %1638 = vmatpush1.bf16.msra.mxu1 %v1637_v38  ;;  %1512 = vmatprep.subr.bf16.mxu0 %v1511_v39  ;;  %v302_v59 = vld [vmem:[#allocation2 + $0x168] sm:$0xff]  ;;  %v300_v60 = vld [vmem:[#allocation2 + $0x158] sm:$0xff]  ;;  %v1517_v62 = vpack.c.bf16 %v293_v54, %v289_v53  ;;  %v1645_v63 = vpack.c.bf16 %v295_v57, %v291_v55  ;;  %v297_v1 = vld [vmem:[#allocation2 + $0x140] sm:$0xff] }
  0x5d   : > { %1640 = vmatprep.subr.bf16.mxu1 %v1639_v43  ;;  %v304_v61 = vld [vmem:[#allocation2 + $0x178] sm:$0xff]  ;;  %v1519_v0 = vpack.c.bf16 %v302_v59, %v298_v58  ;;  %v301_v2 = vld [vmem:[#allocation2 + $0x160] sm:$0xff]  ;;  %v299_v3 = vld [vmem:[#allocation2 + $0x150] sm:$0xff] }
  0x5e   : > { %v1647_v4 = vpack.c.bf16 %v304_v61, %v300_v60  ;;  %v303_v5 = vld [vmem:[#allocation2 + $0x170] sm:$0xff]  ;;  %v306_v6 = vld [vmem:[#allocation2 + $0x188] sm:$0xff]  ;;  %v308_v8 = vld [vmem:[#allocation2 + $0x198] sm:$0xff]  ;;  %v1521_v10 = vpack.c.bf16 %v301_v2, %v297_v1 }
  0x5f   : > { %1514 = vmatpush1.bf16.msra.mxu0 %v1513_v50  ;;  %v310_v7 = vld [vmem:[#allocation2 + $0x1a8] sm:$0xff]  ;;  %v312_v9 = vld [vmem:[#allocation2 + $0x1b8] sm:$0xff]  ;;  %v1649_v11 = vpack.c.bf16 %v303_v5, %v299_v3  ;;  %v305_v13 = vld [vmem:[#allocation2 + $0x180] sm:$0xff] }
  0x60   : > { %1642 = vmatpush1.bf16.msra.mxu1 %v1641_v51  ;;  %1516 = vmatprep.subr.bf16.mxu0 %v1515_v52  ;;  %v1523_v12 = vpack.c.bf16 %v310_v7, %v306_v6  ;;  %v309_v14 = vld [vmem:[#allocation2 + $0x1a0] sm:$0xff]  ;;  %v307_v15 = vld [vmem:[#allocation2 + $0x190] sm:$0xff]  ;;  %v1651_v16 = vpack.c.bf16 %v312_v9, %v308_v8  ;;  %v314_v18 = vld [vmem:[#allocation2 + $0x1c8] sm:$0xff] }
  0x61   : > { %1644 = vmatprep.subr.bf16.mxu1 %v1643_v56  ;;  %v311_v17 = vld [vmem:[#allocation2 + $0x1b0] sm:$0xff]  ;;  %v318_v19 = vld [vmem:[#allocation2 + $0x1e8] sm:$0xff]  ;;  %v316_v20 = vld [vmem:[#allocation2 + $0x1d8] sm:$0xff]  ;;  %v1525_v22 = vpack.c.bf16 %v309_v14, %v305_v13 }
  0x62   : > { %v320_v21 = vld [vmem:[#allocation2 + $0x1f8] sm:$0xff]  ;;  %v1653_v23 = vpack.c.bf16 %v311_v17, %v307_v15  ;;  %v1527_v24 = vpack.c.bf16 %v318_v19, %v314_v18  ;;  %v313_v25 = vld [vmem:[#allocation2 + $0x1c0] sm:$0xff]  ;;  %v315_v27 = vld [vmem:[#allocation2 + $0x1d0] sm:$0xff] }
  0x63   : > { %1518 = vmatpush1.bf16.msra.mxu0 %v1517_v62  ;;  %v317_v26 = vld [vmem:[#allocation2 + $0x1e0] sm:$0xff]  ;;  %v1655_v28 = vpack.c.bf16 %v320_v21, %v316_v20  ;;  %v319_v29 = vld [vmem:[#allocation2 + $0x1f0] sm:$0xff]  ;;  %v322_v30 = vld [vmem:[#allocation2 + $0x208] sm:$0xff] }
  0x64   : > { %1646 = vmatpush1.bf16.msra.mxu1 %v1645_v63  ;;  %1520 = vmatprep.subr.bf16.mxu0 %v1519_v0  ;;  %v326_v31 = vld [vmem:[#allocation2 + $0x228] sm:$0xff]  ;;  %v324_v32 = vld [vmem:[#allocation2 + $0x218] sm:$0xff]  ;;  %v1529_v34 = vpack.c.bf16 %v317_v26, %v313_v25  ;;  %v1657_v35 = vpack.c.bf16 %v319_v29, %v315_v27  ;;  %v321_v37 = vld [vmem:[#allocation2 + $0x200] sm:$0xff] }
  0x65   : > { %1648 = vmatprep.subr.bf16.mxu1 %v1647_v4  ;;  %v328_v33 = vld [vmem:[#allocation2 + $0x238] sm:$0xff]  ;;  %v1531_v36 = vpack.c.bf16 %v326_v31, %v322_v30  ;;  %v325_v38 = vld [vmem:[#allocation2 + $0x220] sm:$0xff]  ;;  %v323_v39 = vld [vmem:[#allocation2 + $0x210] sm:$0xff] }
  0x66   : > { %v1659_v40 = vpack.c.bf16 %v328_v33, %v324_v32  ;;  %v327_v41 = vld [vmem:[#allocation2 + $0x230] sm:$0xff]  ;;  %v330_v42 = vld [vmem:[#allocation2 + $0x248] sm:$0xff]  ;;  %v332_v44 = vld [vmem:[#allocation2 + $0x258] sm:$0xff]  ;;  %v1533_v46 = vpack.c.bf16 %v325_v38, %v321_v37 }
  0x67   : > { %1522 = vmatpush1.bf16.msra.mxu0 %v1521_v10  ;;  %v334_v43 = vld [vmem:[#allocation2 + $0x268] sm:$0xff]  ;;  %v336_v45 = vld [vmem:[#allocation2 + $0x278] sm:$0xff]  ;;  %v1661_v47 = vpack.c.bf16 %v327_v41, %v323_v39  ;;  %v329_v49 = vld [vmem:[#allocation2 + $0x240] sm:$0xff] }
  0x68   : > { %1650 = vmatpush1.bf16.msra.mxu1 %v1649_v11  ;;  %1524 = vmatprep.subr.bf16.mxu0 %v1523_v12  ;;  %v1535_v48 = vpack.c.bf16 %v334_v43, %v330_v42  ;;  %v333_v50 = vld [vmem:[#allocation2 + $0x260] sm:$0xff]  ;;  %v331_v51 = vld [vmem:[#allocation2 + $0x250] sm:$0xff]  ;;  %v1663_v52 = vpack.c.bf16 %v336_v45, %v332_v44  ;;  %v338_v54 = vld [vmem:[#allocation2 + $0x288] sm:$0xff] }
  0x69   : > { %1652 = vmatprep.subr.bf16.mxu1 %v1651_v16  ;;  %v335_v53 = vld [vmem:[#allocation2 + $0x270] sm:$0xff]  ;;  %v342_v55 = vld [vmem:[#allocation2 + $0x2a8] sm:$0xff]  ;;  %v340_v56 = vld [vmem:[#allocation2 + $0x298] sm:$0xff]  ;;  %v1537_v58 = vpack.c.bf16 %v333_v50, %v329_v49 }
  0x6a   : > { %v344_v57 = vld [vmem:[#allocation2 + $0x2b8] sm:$0xff]  ;;  %v1665_v59 = vpack.c.bf16 %v335_v53, %v331_v51  ;;  %v1539_v60 = vpack.c.bf16 %v342_v55, %v338_v54  ;;  %v337_v61 = vld [vmem:[#allocation2 + $0x280] sm:$0xff]  ;;  %v339_v63 = vld [vmem:[#allocation2 + $0x290] sm:$0xff] }
  0x6b   : > { %1526 = vmatpush1.bf16.msra.mxu0 %v1525_v22  ;;  %v341_v62 = vld [vmem:[#allocation2 + $0x2a0] sm:$0xff]  ;;  %v1667_v0 = vpack.c.bf16 %v344_v57, %v340_v56  ;;  %v343_v1 = vld [vmem:[#allocation2 + $0x2b0] sm:$0xff]  ;;  %v346_v2 = vld [vmem:[#allocation2 + $0x2c8] sm:$0xff] }
  0x6c   : > { %1654 = vmatpush1.bf16.msra.mxu1 %v1653_v23  ;;  %1528 = vmatprep.subr.bf16.mxu0 %v1527_v24  ;;  %v350_v3 = vld [vmem:[#allocation2 + $0x2e8] sm:$0xff]  ;;  %v348_v4 = vld [vmem:[#allocation2 + $0x2d8] sm:$0xff]  ;;  %v1541_v6 = vpack.c.bf16 %v341_v62, %v337_v61  ;;  %v345_v7 = vld [vmem:[#allocation2 + $0x2c0] sm:$0xff]  ;;  %v1669_v8 = vpack.c.bf16 %v343_v1, %v339_v63 }
  0x6d   : > { %1656 = vmatprep.subr.bf16.mxu1 %v1655_v28  ;;  %v352_v5 = vld [vmem:[#allocation2 + $0x2f8] sm:$0xff]  ;;  %v1543_v9 = vpack.c.bf16 %v350_v3, %v346_v2  ;;  %v349_v10 = vld [vmem:[#allocation2 + $0x2e0] sm:$0xff]  ;;  %v347_v11 = vld [vmem:[#allocation2 + $0x2d0] sm:$0xff] }
  0x6e   : > { %v351_v12 = vld [vmem:[#allocation2 + $0x2f0] sm:$0xff]  ;;  %v1671_v13 = vpack.c.bf16 %v352_v5, %v348_v4  ;;  %v354_v14 = vld [vmem:[#allocation2 + $0x308] sm:$0xff]  ;;  %v356_v17 = vld [vmem:[#allocation2 + $0x318] sm:$0xff]  ;;  %v1545_v19 = vpack.c.bf16 %v349_v10, %v345_v7 }
  0x6f   : > { %1530 = vmatpush1.bf16.msra.mxu0 %v1529_v34  ;;  %v358_v15 = vld [vmem:[#allocation2 + $0x328] sm:$0xff]  ;;  %v360_v18 = vld [vmem:[#allocation2 + $0x338] sm:$0xff]  ;;  %v1673_v20 = vpack.c.bf16 %v351_v12, %v347_v11  ;;  %v353_v22 = vld [vmem:[#allocation2 + $0x300] sm:$0xff] }
  0x70   : > { %1658 = vmatpush1.bf16.msra.mxu1 %v1657_v35  ;;  %1532 = vmatprep.subr.bf16.mxu0 %v1531_v36  ;;  %v254_v16 = vld [vmem:[%s2382_s26 + $0x8] sm:$0xff]  ;;  %v1547_v21 = vpack.c.bf16 %v358_v15, %v354_v14  ;;  %v357_v23 = vld [vmem:[#allocation2 + $0x320] sm:$0xff]  ;;  %v355_v24 = vld [vmem:[#allocation2 + $0x310] sm:$0xff]  ;;  %v1675_v25 = vpack.c.bf16 %v360_v18, %v356_v17 }
  0x71   : > { %1660 = vmatprep.subr.bf16.mxu1 %v1659_v40  ;;  %599 = vmatprep.mubr.f32.mxu0 %v254_v16  ;;  %v359_v26 = vld [vmem:[#allocation2 + $0x330] sm:$0xff]  ;;  %v362_v27 = vld [vmem:[#allocation2 + $0x348] sm:$0xff]  ;;  %v364_v29 = vld [vmem:[#allocation2 + $0x358] sm:$0xff]  ;;  %v1549_v31 = vpack.c.bf16 %v357_v23, %v353_v22 }
  0x72   : > { %741 = vmatprep.mubr.f32.mxu1 %v254_v16  ;;  %v366_v28 = vld [vmem:[#allocation2 + $0x368] sm:$0xff]  ;;  %v368_v30 = vld [vmem:[#allocation2 + $0x378] sm:$0xff]  ;;  %v1677_v32 = vpack.c.bf16 %v359_v26, %v355_v24  ;;  %v361_v34 = vld [vmem:[#allocation2 + $0x340] sm:$0xff] }
  0x73   : > { %1534 = vmatpush1.bf16.msra.mxu0 %v1533_v46  ;;  %v1551_v33 = vpack.c.bf16 %v366_v28, %v362_v27  ;;  %v365_v35 = vld [vmem:[#allocation2 + $0x360] sm:$0xff]  ;;  %v363_v36 = vld [vmem:[#allocation2 + $0x350] sm:$0xff]  ;;  %v1679_v37 = vpack.c.bf16 %v368_v30, %v364_v29  ;;  %v370_v39 = vld [vmem:[#allocation2 + $0x388] sm:$0xff] }
  0x74   : > { %1662 = vmatpush1.bf16.msra.mxu1 %v1661_v47  ;;  %1536 = vmatprep.subr.bf16.mxu0 %v1535_v48  ;;  %v367_v38 = vld [vmem:[#allocation2 + $0x370] sm:$0xff]  ;;  %v374_v40 = vld [vmem:[#allocation2 + $0x3a8] sm:$0xff]  ;;  %v372_v41 = vld [vmem:[#allocation2 + $0x398] sm:$0xff]  ;;  %v1553_v43 = vpack.c.bf16 %v365_v35, %v361_v34 }
  0x75   : > { %1664 = vmatprep.subr.bf16.mxu1 %v1663_v52  ;;  %v376_v42 = vld [vmem:[#allocation2 + $0x3b8] sm:$0xff]  ;;  %v1681_v44 = vpack.c.bf16 %v367_v38, %v363_v36  ;;  %v1555_v45 = vpack.c.bf16 %v374_v40, %v370_v39  ;;  %v369_v46 = vld [vmem:[#allocation2 + $0x380] sm:$0xff]  ;;  %v371_v48 = vld [vmem:[#allocation2 + $0x390] sm:$0xff] }
  0x76   : > { %v373_v47 = vld [vmem:[#allocation2 + $0x3a0] sm:$0xff]  ;;  %v1683_v49 = vpack.c.bf16 %v376_v42, %v372_v41  ;;  %v375_v50 = vld [vmem:[#allocation2 + $0x3b0] sm:$0xff]  ;;  %v378_v51 = vld [vmem:[#allocation2 + $0x3c8] sm:$0xff] }
  0x77   : > { %1538 = vmatpush1.bf16.msra.mxu0 %v1537_v58  ;;  %v382_v52 = vld [vmem:[#allocation2 + $0x3e8] sm:$0xff]  ;;  %v380_v53 = vld [vmem:[#allocation2 + $0x3d8] sm:$0xff]  ;;  %v1557_v55 = vpack.c.bf16 %v373_v47, %v369_v46  ;;  %v1685_v56 = vpack.c.bf16 %v375_v50, %v371_v48  ;;  %v377_v58 = vld [vmem:[#allocation2 + $0x3c0] sm:$0xff] }
  0x78   : > { %1666 = vmatpush1.bf16.msra.mxu1 %v1665_v59  ;;  %1540 = vmatprep.subr.bf16.mxu0 %v1539_v60  ;;  %v384_v54 = vld [vmem:[#allocation2 + $0x3f8] sm:$0xff]  ;;  %v1559_v57 = vpack.c.bf16 %v382_v52, %v378_v51  ;;  %v381_v59 = vld [vmem:[#allocation2 + $0x3e0] sm:$0xff]  ;;  %v379_v60 = vld [vmem:[#allocation2 + $0x3d0] sm:$0xff] }
  0x79   : > { %1668 = vmatprep.subr.bf16.mxu1 %v1667_v0  ;;  %v1687_v61 = vpack.c.bf16 %v384_v54, %v380_v53  ;;  %v383_v62 = vld [vmem:[#allocation2 + $0x3f0] sm:$0xff]  ;;  %v386_v63 = vld [vmem:[#allocation2 + $0x408] sm:$0xff]  ;;  %v388_v1 = vld [vmem:[#allocation2 + $0x418] sm:$0xff]  ;;  %v1561_v3 = vpack.c.bf16 %v381_v59, %v377_v58 }
  0x7a   : > { %v390_v0 = vld [vmem:[#allocation2 + $0x428] sm:$0xff]  ;;  %v392_v2 = vld [vmem:[#allocation2 + $0x438] sm:$0xff]  ;;  %v1689_v4 = vpack.c.bf16 %v383_v62, %v379_v60  ;;  %v389_v7 = vld [vmem:[#allocation2 + $0x420] sm:$0xff] }
  0x7b   : > { %1542 = vmatpush1.bf16.msra.mxu0 %v1541_v6  ;;  %v1563_v5 = vpack.c.bf16 %v390_v0, %v386_v63  ;;  %v385_v6 = vld [vmem:[#allocation2 + $0x400] sm:$0xff]  ;;  %v391_v10 = vld [vmem:[#allocation2 + $0x430] sm:$0xff]  ;;  %v394_v11 = vld [vmem:[#allocation2 + $0x448] sm:$0xff] }
  0x7c   : > { %1670 = vmatpush1.bf16.msra.mxu1 %v1669_v8  ;;  %1544 = vmatprep.subr.bf16.mxu0 %v1543_v9  ;;  %v387_v8 = vld [vmem:[#allocation2 + $0x410] sm:$0xff]  ;;  %v1691_v9 = vpack.c.bf16 %v392_v2, %v388_v1  ;;  %v398_v12 = vld [vmem:[#allocation2 + $0x468] sm:$0xff]  ;;  %v400_v14 = vld [vmem:[#allocation2 + $0x478] sm:$0xff]  ;;  %v1565_v16 = vpack.c.bf16 %v389_v7, %v385_v6 }
  0x7d   : > { %1672 = vmatprep.subr.bf16.mxu1 %v1671_v13  ;;  %v396_v13 = vld [vmem:[#allocation2 + $0x458] sm:$0xff]  ;;  %v253_v15 = vld [vmem:[%s2382_s26] sm:$0xff]  ;;  %v1693_v17 = vpack.c.bf16 %v391_v10, %v387_v8  ;;  %v1567_v18 = vpack.c.bf16 %v398_v12, %v394_v11  ;;  %v399_v23 = vld [vmem:[#allocation2 + $0x470] sm:$0xff] }
  0x7e   : > { %v1695_v22 = vpack.c.bf16 %v400_v14, %v396_v13  ;;  %v402_v24 = vld [vmem:[#allocation2 + $0x488] sm:$0xff]  ;;  %v404_v26 = vld [vmem:[#allocation2 + $0x498] sm:$0xff]  ;;  %v407_v35 = vld [vmem:[#allocation2 + $0x4b0] sm:$0xff] }
  0x7f   : > { %1546 = vmatpush1.bf16.msra.mxu0 %v1545_v19  ;;  %v393_v19 = vld [vmem:[#allocation2 + $0x440] sm:$0xff]  ;;  %v408_v27 = vld [vmem:[#allocation2 + $0x4b8] sm:$0xff]  ;;  %v410_v36 = vld [vmem:[#allocation2 + $0x4c8] sm:$0xff] }
  0x80   : > { %1674 = vmatpush1.bf16.msra.mxu1 %v1673_v20  ;;  %1548 = vmatprep.subr.bf16.mxu0 %v1547_v21  ;;  %v397_v20 = vld [vmem:[#allocation2 + $0x460] sm:$0xff]  ;;  %v395_v21 = vld [vmem:[#allocation2 + $0x450] sm:$0xff]  ;;  %v1699_v34 = vpack.c.bf16 %v408_v27, %v404_v26  ;;  %v412_v38 = vld [vmem:[#allocation2 + $0x4d8] sm:$0xff] }
  0x81   : > { %1676 = vmatprep.subr.bf16.mxu1 %v1675_v25  ;;  %v406_v25 = vld [vmem:[#allocation2 + $0x4a8] sm:$0xff]  ;;  %v1569_v28 = vpack.c.bf16 %v397_v20, %v393_v19  ;;  %v1697_v29 = vpack.c.bf16 %v399_v23, %v395_v21  ;;  %v416_v39 = vld [vmem:[#allocation2 + $0x4f8] sm:$0xff]  ;;  %v415_v47 = vld [vmem:[#allocation2 + $0x4f0] sm:$0xff] }
  0x82   : > { %v1571_v30 = vpack.c.bf16 %v406_v25, %v402_v24  ;;  %v1703_v46 = vpack.c.bf16 %v416_v39, %v412_v38  ;;  %v418_v48 = vld [vmem:[#allocation2 + $0x508] sm:$0xff]  ;;  %v420_v50 = vld [vmem:[#allocation2 + $0x518] sm:$0xff]  ;;  %v423_v59 = vld [vmem:[#allocation2 + $0x530] sm:$0xff] }
  0x83   : > { %1550 = vmatpush1.bf16.msra.mxu0 %v1549_v31  ;;  %v401_v31 = vld [vmem:[#allocation2 + $0x480] sm:$0xff]  ;;  %v424_v51 = vld [vmem:[#allocation2 + $0x538] sm:$0xff]  ;;  %v426_v60 = vld [vmem:[#allocation2 + $0x548] sm:$0xff] }
  0x84   : > { %1678 = vmatpush1.bf16.msra.mxu1 %v1677_v32  ;;  %1552 = vmatprep.subr.bf16.mxu0 %v1551_v33  ;;  %v405_v32 = vld [vmem:[#allocation2 + $0x4a0] sm:$0xff]  ;;  %v403_v33 = vld [vmem:[#allocation2 + $0x490] sm:$0xff]  ;;  %v1707_v58 = vpack.c.bf16 %v424_v51, %v420_v50  ;;  %v428_v62 = vld [vmem:[#allocation2 + $0x558] sm:$0xff] }
  0x85   : > { %1680 = vmatprep.subr.bf16.mxu1 %v1679_v37  ;;  %v414_v37 = vld [vmem:[#allocation2 + $0x4e8] sm:$0xff]  ;;  %v1573_v40 = vpack.c.bf16 %v405_v32, %v401_v31  ;;  %v1701_v41 = vpack.c.bf16 %v407_v35, %v403_v33  ;;  %v432_v63 = vld [vmem:[#allocation2 + $0x578] sm:$0xff]  ;;  %v431_v7 = vld [vmem:[#allocation2 + $0x570] sm:$0xff] }
  0x86   : > { %v1575_v42 = vpack.c.bf16 %v414_v37, %v410_v36  ;;  %v1711_v6 = vpack.c.bf16 %v432_v63, %v428_v62  ;;  %v434_v8 = vld [vmem:[#allocation2 + $0x588] sm:$0xff]  ;;  %v436_v10 = vld [vmem:[#allocation2 + $0x598] sm:$0xff]  ;;  %v433_v13 = vld [vmem:[#allocation2 + $0x580] sm:$0xff] }
  0x87   : > { %1554 = vmatpush1.bf16.msra.mxu0 %v1553_v43  ;;  %v409_v43 = vld [vmem:[#allocation2 + $0x4c0] sm:$0xff]  ;;  %v440_v11 = vld [vmem:[#allocation2 + $0x5b8] sm:$0xff]  ;;  %v442_v20 = vld [vmem:[#allocation2 + $0x5c8] sm:$0xff] }
  0x88   : > { %1682 = vmatpush1.bf16.msra.mxu1 %v1681_v44  ;;  %1556 = vmatprep.subr.bf16.mxu0 %v1555_v45  ;;  %v413_v44 = vld [vmem:[#allocation2 + $0x4e0] sm:$0xff]  ;;  %v411_v45 = vld [vmem:[#allocation2 + $0x4d0] sm:$0xff]  ;;  %v1715_v19 = vpack.c.bf16 %v440_v11, %v436_v10  ;;  %v446_v21 = vld [vmem:[#allocation2 + $0x5e8] sm:$0xff] }
  0x89   : > { %1684 = vmatprep.subr.bf16.mxu1 %v1683_v49  ;;  %v422_v49 = vld [vmem:[#allocation2 + $0x528] sm:$0xff]  ;;  %v1577_v52 = vpack.c.bf16 %v413_v44, %v409_v43  ;;  %v1705_v53 = vpack.c.bf16 %v415_v47, %v411_v45  ;;  %v444_v23 = vld [vmem:[#allocation2 + $0x5d8] sm:$0xff]  ;;  %v1591_v27 = vpack.c.bf16 %v446_v21, %v442_v20  ;;  %v447_v32 = vld [vmem:[#allocation2 + $0x5f0] sm:$0xff] }
  0x8a   : > { %v1579_v54 = vpack.c.bf16 %v422_v49, %v418_v48  ;;  %v448_v24 = vld [vmem:[#allocation2 + $0x5f8] sm:$0xff]  ;;  %v450_v33 = vld [vmem:[#allocation2 + $0x608] sm:$0xff]  ;;  %v455_v44 = vld [vmem:[#allocation2 + $0x630] sm:$0xff] }
  0x8b   : > { %1558 = vmatpush1.bf16.msra.mxu0 %v1557_v55  ;;  %v417_v55 = vld [vmem:[#allocation2 + $0x500] sm:$0xff]  ;;  %v1719_v31 = vpack.c.bf16 %v448_v24, %v444_v23  ;;  %v452_v35 = vld [vmem:[#allocation2 + $0x618] sm:$0xff]  ;;  %v458_v45 = vld [vmem:[#allocation2 + $0x648] sm:$0xff] }
  0x8c   : > { %1686 = vmatpush1.bf16.msra.mxu1 %v1685_v56  ;;  %1560 = vmatprep.subr.bf16.mxu0 %v1559_v57  ;;  %v421_v56 = vld [vmem:[#allocation2 + $0x520] sm:$0xff]  ;;  %v419_v57 = vld [vmem:[#allocation2 + $0x510] sm:$0xff]  ;;  %v456_v36 = vld [vmem:[#allocation2 + $0x638] sm:$0xff] }
  0x8d   : > { %1688 = vmatprep.subr.bf16.mxu1 %v1687_v61  ;;  %v430_v61 = vld [vmem:[#allocation2 + $0x568] sm:$0xff]  ;;  %v1581_v0 = vpack.c.bf16 %v421_v56, %v417_v55  ;;  %v1709_v1 = vpack.c.bf16 %v423_v59, %v419_v57  ;;  %v1723_v43 = vpack.c.bf16 %v456_v36, %v452_v35  ;;  %v460_v47 = vld [vmem:[#allocation2 + $0x658] sm:$0xff]  ;;  %v463_v56 = vld [vmem:[#allocation2 + $0x670] sm:$0xff] }
  0x8e   : > { %v1583_v2 = vpack.c.bf16 %v430_v61, %v426_v60  ;;  %v464_v48 = vld [vmem:[#allocation2 + $0x678] sm:$0xff]  ;;  %v466_v57 = vld [vmem:[#allocation2 + $0x688] sm:$0xff]  ;;  %v481_v24 = vld [vmem:[#allocation2 + $0x700] sm:$0xff] }
  0x8f   : > { %1562 = vmatpush1.bf16.msra.mxu0 %v1561_v3  ;;  %v425_v3 = vld [vmem:[#allocation2 + $0x540] sm:$0xff]  ;;  %v1727_v55 = vpack.c.bf16 %v464_v48, %v460_v47  ;;  %v468_v59 = vld [vmem:[#allocation2 + $0x698] sm:$0xff] }
  0x90   : > { %1690 = vmatpush1.bf16.msra.mxu1 %v1689_v4  ;;  %1564 = vmatprep.subr.bf16.mxu0 %v1563_v5  ;;  %v429_v4 = vld [vmem:[#allocation2 + $0x560] sm:$0xff]  ;;  %v427_v5 = vld [vmem:[#allocation2 + $0x550] sm:$0xff]  ;;  %v472_v60 = vld [vmem:[#allocation2 + $0x6b8] sm:$0xff] }
  0x91   : > { %1692 = vmatprep.subr.bf16.mxu1 %v1691_v9  ;;  %v438_v9 = vld [vmem:[#allocation2 + $0x5a8] sm:$0xff]  ;;  %v1585_v12 = vpack.c.bf16 %v429_v4, %v425_v3  ;;  %v1713_v14 = vpack.c.bf16 %v431_v7, %v427_v5  ;;  %v1731_v3 = vpack.c.bf16 %v472_v60, %v468_v59  ;;  %v471_v4 = vld [vmem:[#allocation2 + $0x6b0] sm:$0xff]  ;;  %v476_v7 = vld [vmem:[#allocation2 + $0x6d8] sm:$0xff] }
  0x92   : > { %600 = vmatmul.mubr.f32.vlgmr.msra.gmra.mrb[0].mxu0 %v253_v15  ;;  %v474_v5 = vld [vmem:[#allocation2 + $0x6c8] sm:$0xff]  ;;  %v488_v20 = vld [vmem:[#allocation2 + $0x738] sm:$0xff]  ;;  %v489_v36 = vld [vmem:[#allocation2 + $0x740] sm:$0xff] }
  0x93   : > { %1566 = vmatpush1.bf16.msra.mxu0 %v1565_v16  ;;  %742 = vmatmul.mubr.f32.vlgmr.msra.gmra.mrb[0].mxu1 %v253_v15  ;;  %v1587_v15 = vpack.c.bf16 %v438_v9, %v434_v8  ;;  %v437_v16 = vld [vmem:[#allocation2 + $0x5a0] sm:$0xff]  ;;  %v480_v8 = vld [vmem:[#allocation2 + $0x6f8] sm:$0xff] }
  0x94   : > { %1694 = vmatpush1.bf16.msra.mxu1 %v1693_v17  ;;  %1568 = vmatprep.subr.bf16.mxu0 %v1567_v18  ;;  %v435_v17 = vld [vmem:[#allocation2 + $0x590] sm:$0xff]  ;;  %v1589_v25 = vpack.c.bf16 %v437_v16, %v433_v13  ;;  %v477_v13 = vld [vmem:[#allocation2 + $0x6e0] sm:$0xff] }
  0x95   : > { %1696 = vmatprep.subr.bf16.mxu1 %v1695_v22  ;;  %v439_v18 = vld [vmem:[#allocation2 + $0x5b0] sm:$0xff]  ;;  %v256_v22 = vld [vmem:[%s2382_s26 + $0x18] sm:$0xff]  ;;  %v497_v48 = vld [vmem:[#allocation2 + $0x780] sm:$0xff] }
  0x96   : > { %670 = vmatprep.mubr.f32.mxu0 %v256_v22  ;;  %812 = vmatprep.mubr.f32.mxu1 %v256_v22  ;;  %v1717_v26 = vpack.c.bf16 %v439_v18, %v435_v17  ;;  %v479_v16 = vld [vmem:[#allocation2 + $0x6f0] sm:$0xff]  ;;  %v482_v17 = vld [vmem:[#allocation2 + $0x708] sm:$0xff]  ;;  %v505_v60 = vld [vmem:[#allocation2 + $0x7c0] sm:$0xff] }
  0x97   : > { %1570 = vmatpush1.bf16.msra.mxu0 %v1569_v28  ;;  %v441_v28 = vld [vmem:[#allocation2 + $0x5c0] sm:$0xff]  ;;  %v486_v18 = vld [vmem:[#allocation2 + $0x728] sm:$0xff] }
  0x98   : > { %1698 = vmatpush1.bf16.msra.mxu1 %v1697_v29  ;;  %1572 = vmatprep.subr.bf16.mxu0 %v1571_v30  ;;  %v445_v29 = vld [vmem:[#allocation2 + $0x5e0] sm:$0xff]  ;;  %v443_v30 = vld [vmem:[#allocation2 + $0x5d0] sm:$0xff]  ;;  %v1611_v23 = vpack.c.bf16 %v486_v18, %v482_v17 }
  0x99   : > { %1700 = vmatprep.subr.bf16.mxu1 %v1699_v34  ;;  %v454_v34 = vld [vmem:[#allocation2 + $0x628] sm:$0xff]  ;;  %v1593_v37 = vpack.c.bf16 %v445_v29, %v441_v28  ;;  %v1721_v38 = vpack.c.bf16 %v447_v32, %v443_v30  ;;  %v487_v28 = vld [vmem:[#allocation2 + $0x730] sm:$0xff]  ;;  %v496_v32 = vld [vmem:[#allocation2 + $0x778] sm:$0xff] }
  0x9a   : > { %v1595_v39 = vpack.c.bf16 %v454_v34, %v450_v33  ;;  %v490_v29 = vld [vmem:[#allocation2 + $0x748] sm:$0xff]  ;;  %v255_v17 = vld [vmem:[%s2382_s26 + $0x10] sm:$0xff]  ;;  %s2151_s26 = scalar_lea.vmem %s2150_s25, 1024 }
  0x9b   : > { %1574 = vmatpush1.bf16.msra.mxu0 %v1573_v40  ;;  %v449_v40 = vld [vmem:[#allocation2 + $0x600] sm:$0xff]  ;;  %v494_v30 = vld [vmem:[#allocation2 + $0x768] sm:$0xff]  ;;  %p2153_p7 = scmp.lt.s32.totalorder %s2151_s26, %s2145_s8 }
  0x9c   : > { %1702 = vmatpush1.bf16.msra.mxu1 %v1701_v41  ;;  %1576 = vmatprep.subr.bf16.mxu0 %v1575_v42  ;;  %v453_v41 = vld [vmem:[#allocation2 + $0x620] sm:$0xff]  ;;  %v451_v42 = vld [vmem:[#allocation2 + $0x610] sm:$0xff]  ;;  %v1615_v35 = vpack.c.bf16 %v494_v30, %v490_v29  ;;  %v842_v29 = vld [vmem:[#allocation5 + $0xb8] sm:$0xff] }
  0x9d   : > { %1704 = vmatprep.subr.bf16.mxu1 %v1703_v46  ;;  %v462_v46 = vld [vmem:[#allocation2 + $0x668] sm:$0xff]  ;;  %v1597_v49 = vpack.c.bf16 %v453_v41, %v449_v40  ;;  %v1725_v50 = vpack.c.bf16 %v455_v44, %v451_v42  ;;  %v495_v40 = vld [vmem:[#allocation2 + $0x770] sm:$0xff]  ;;  %v504_v44 = vld [vmem:[#allocation2 + $0x7b8] sm:$0xff]  ;;  %p2154_p8 = por %p2153_p7, %p2152_p4 }
  0x9e   : > { %v1599_v51 = vpack.c.bf16 %v462_v46, %v458_v45  ;;  %v498_v41 = vld [vmem:[#allocation2 + $0x788] sm:$0xff] }
  0x9f   : > { %1578 = vmatpush1.bf16.msra.mxu0 %v1577_v52  ;;  %v457_v52 = vld [vmem:[#allocation2 + $0x640] sm:$0xff]  ;;  %v502_v42 = vld [vmem:[#allocation2 + $0x7a8] sm:$0xff]  ;;  %p2155_p11 = pnand %p2154_p8, %p2148_p3 }
  0xa0   : > { %1706 = vmatpush1.bf16.msra.mxu1 %v1705_v53  ;;  %1580 = vmatprep.subr.bf16.mxu0 %v1579_v54  ;;  %v461_v53 = vld [vmem:[#allocation2 + $0x660] sm:$0xff]  ;;  %v459_v54 = vld [vmem:[#allocation2 + $0x650] sm:$0xff]  ;;  %v1619_v47 = vpack.c.bf16 %v502_v42, %v498_v41  ;;  %v850_v41 = vld [vmem:[#allocation5 + $0xf8] sm:$0xff] }
  0xa1   : > { %1708 = vmatprep.subr.bf16.mxu1 %v1707_v58  ;;  %v470_v58 = vld [vmem:[#allocation2 + $0x6a8] sm:$0xff]  ;;  %v1601_v61 = vpack.c.bf16 %v461_v53, %v457_v52  ;;  %v1729_v62 = vpack.c.bf16 %v463_v56, %v459_v54  ;;  %v503_v52 = vld [vmem:[#allocation2 + $0x7b0] sm:$0xff]  ;;  %v512_v56 = vld [vmem:[#allocation2 + $0x7f8] sm:$0xff] }
  0xa2   : > { %v1603_v63 = vpack.c.bf16 %v470_v58, %v466_v57  ;;  %v506_v53 = vld [vmem:[#allocation2 + $0x7c8] sm:$0xff] }
  0xa3   : > { %1582 = vmatpush1.bf16.msra.mxu0 %v1581_v0  ;;  %v465_v0 = vld [vmem:[#allocation2 + $0x680] sm:$0xff]  ;;  %v510_v54 = vld [vmem:[#allocation2 + $0x7e8] sm:$0xff] }
  0xa4   : > { %1710 = vmatpush1.bf16.msra.mxu1 %v1709_v1  ;;  %1584 = vmatprep.subr.bf16.mxu0 %v1583_v2  ;;  %v469_v1 = vld [vmem:[#allocation2 + $0x6a0] sm:$0xff]  ;;  %v467_v2 = vld [vmem:[#allocation2 + $0x690] sm:$0xff]  ;;  %v1623_v59 = vpack.c.bf16 %v510_v54, %v506_v53  ;;  %v858_v53 = vld [vmem:[#allocation5 + $0x138] sm:$0xff] }
  0xa5   : > { %1712 = vmatprep.subr.bf16.mxu1 %v1711_v6  ;;  %v478_v6 = vld [vmem:[#allocation2 + $0x6e8] sm:$0xff]  ;;  %v1605_v9 = vpack.c.bf16 %v469_v1, %v465_v0  ;;  %v1733_v10 = vpack.c.bf16 %v471_v4, %v467_v2  ;;  %v511_v0 = vld [vmem:[#allocation2 + $0x7f0] sm:$0xff]  ;;  %v826_v4 = vld [vmem:[#allocation5 + $0x38] sm:$0xff] }
  0xa6   : > { %v1607_v11 = vpack.c.bf16 %v478_v6, %v474_v5  ;;  %v820_v1 = vld [vmem:[#allocation5 + $0x8] sm:$0xff] }
  0xa7   : > { %1586 = vmatpush1.bf16.msra.mxu0 %v1585_v12  ;;  %v473_v12 = vld [vmem:[#allocation2 + $0x6c0] sm:$0xff]  ;;  %v824_v2 = vld [vmem:[#allocation5 + $0x28] sm:$0xff] }
  0xa8   : > { %1714 = vmatpush1.bf16.msra.mxu1 %v1713_v14  ;;  %1588 = vmatprep.subr.bf16.mxu0 %v1587_v15  ;;  %v475_v14 = vld [vmem:[#allocation2 + $0x6d0] sm:$0xff]  ;;  %v1735_v15 = vpack.c.bf16 %v480_v8, %v476_v7  ;;  %v1609_v21 = vpack.c.bf16 %v477_v13, %v473_v12  ;;  %v1755_v7 = vpack.c.bf16 %v824_v2, %v820_v1  ;;  %v819_v8 = vld [vmem:[#allocation5] sm:$0xff]  ;;  %v828_v13 = vld [vmem:[#allocation5 + $0x48] sm:$0xff] }
  0xa9   : > { %1716 = vmatprep.subr.bf16.mxu1 %v1715_v19  ;;  %v484_v19 = vld [vmem:[#allocation2 + $0x718] sm:$0xff]  ;;  %v1737_v22 = vpack.c.bf16 %v479_v16, %v475_v14  ;;  %v825_v12 = vld [vmem:[#allocation5 + $0x30] sm:$0xff]  ;;  %v832_v14 = vld [vmem:[#allocation5 + $0x68] sm:$0xff] }
  0xaa   : > { %v834_v16 = vld [vmem:[#allocation5 + $0x78] sm:$0xff] }
  0xab   : > { %1590 = vmatpush1.bf16.msra.mxu0 %v1589_v25  ;;  %v485_v25 = vld [vmem:[#allocation2 + $0x720] sm:$0xff]  ;;  %v866_v1 = vld [vmem:[#allocation5 + $0x178] sm:$0xff] }
  0xac   : > { %1718 = vmatpush1.bf16.msra.mxu1 %v1717_v26  ;;  %1592 = vmatprep.subr.bf16.mxu0 %v1591_v27  ;;  %v483_v26 = vld [vmem:[#allocation2 + $0x710] sm:$0xff]  ;;  %v1739_v27 = vpack.c.bf16 %v488_v20, %v484_v19  ;;  %v1613_v33 = vpack.c.bf16 %v485_v25, %v481_v24  ;;  %v1759_v20 = vpack.c.bf16 %v832_v14, %v828_v13  ;;  %v874_v13 = vld [vmem:[#allocation5 + $0x1b8] sm:$0xff] }
  0xad   : > { %1720 = vmatprep.subr.bf16.mxu1 %v1719_v31  ;;  %v492_v31 = vld [vmem:[#allocation2 + $0x758] sm:$0xff]  ;;  %v1741_v34 = vpack.c.bf16 %v487_v28, %v483_v26  ;;  %v833_v25 = vld [vmem:[#allocation5 + $0x70] sm:$0xff]  ;;  %v836_v26 = vld [vmem:[#allocation5 + $0x88] sm:$0xff] }
  0xae   : > { %v838_v28 = vld [vmem:[#allocation5 + $0x98] sm:$0xff] }
  0xaf   : > { %1594 = vmatpush1.bf16.msra.mxu0 %v1593_v37  ;;  %v493_v37 = vld [vmem:[#allocation2 + $0x760] sm:$0xff] }
  0xb0   : > { %1722 = vmatpush1.bf16.msra.mxu1 %v1721_v38  ;;  %1596 = vmatprep.subr.bf16.mxu0 %v1595_v39  ;;  %v491_v38 = vld [vmem:[#allocation2 + $0x750] sm:$0xff]  ;;  %v1743_v39 = vpack.c.bf16 %v496_v32, %v492_v31  ;;  %v1617_v45 = vpack.c.bf16 %v493_v37, %v489_v36  ;;  %v1891_v36 = vpack.c.bf16 %v842_v29, %v838_v28  ;;  %v875_v29 = vld [vmem:[#allocation5 + $0x1c0] sm:$0xff] }
  0xb1   : > { %1724 = vmatprep.subr.bf16.mxu1 %v1723_v43  ;;  %v500_v43 = vld [vmem:[#allocation2 + $0x798] sm:$0xff]  ;;  %v1745_v46 = vpack.c.bf16 %v495_v40, %v491_v38  ;;  %v841_v37 = vld [vmem:[#allocation5 + $0xb0] sm:$0xff]  ;;  %v844_v38 = vld [vmem:[#allocation5 + $0xc8] sm:$0xff] }
  0xb2   : > { %v846_v40 = vld [vmem:[#allocation5 + $0xd8] sm:$0xff] }
  0xb3   : > { %1598 = vmatpush1.bf16.msra.mxu0 %v1597_v49  ;;  %v501_v49 = vld [vmem:[#allocation2 + $0x7a0] sm:$0xff] }
  0xb4   : > { %1726 = vmatpush1.bf16.msra.mxu1 %v1725_v50  ;;  %1600 = vmatprep.subr.bf16.mxu0 %v1599_v51  ;;  %v499_v50 = vld [vmem:[#allocation2 + $0x790] sm:$0xff]  ;;  %v1747_v51 = vpack.c.bf16 %v504_v44, %v500_v43  ;;  %v1621_v57 = vpack.c.bf16 %v501_v49, %v497_v48  ;;  %v1895_v48 = vpack.c.bf16 %v850_v41, %v846_v40  ;;  %v883_v41 = vld [vmem:[#allocation5 + $0x200] sm:$0xff] }
  0xb5   : > { %1728 = vmatprep.subr.bf16.mxu1 %v1727_v55  ;;  %v508_v55 = vld [vmem:[#allocation2 + $0x7d8] sm:$0xff]  ;;  %v1749_v58 = vpack.c.bf16 %v503_v52, %v499_v50  ;;  %v849_v49 = vld [vmem:[#allocation5 + $0xf0] sm:$0xff]  ;;  %v852_v50 = vld [vmem:[#allocation5 + $0x108] sm:$0xff] }
  0xb6   : > { %v854_v52 = vld [vmem:[#allocation5 + $0x118] sm:$0xff] }
  0xb7   : > { %1602 = vmatpush1.bf16.msra.mxu0 %v1601_v61  ;;  %v509_v61 = vld [vmem:[#allocation2 + $0x7e0] sm:$0xff] }
  0xb8   : > { %1730 = vmatpush1.bf16.msra.mxu1 %v1729_v62  ;;  %1604 = vmatprep.subr.bf16.mxu0 %v1603_v63  ;;  %v507_v62 = vld [vmem:[#allocation2 + $0x7d0] sm:$0xff]  ;;  %v1751_v63 = vpack.c.bf16 %v512_v56, %v508_v55  ;;  %v1625_v5 = vpack.c.bf16 %v509_v61, %v505_v60  ;;  %v1899_v60 = vpack.c.bf16 %v858_v53, %v854_v52  ;;  %v891_v53 = vld [vmem:[#allocation5 + $0x240] sm:$0xff] }
  0xb9   : > { %1732 = vmatprep.subr.bf16.mxu1 %v1731_v3  ;;  %v822_v3 = vld [vmem:[#allocation5 + $0x18] sm:$0xff]  ;;  %v1753_v6 = vpack.c.bf16 %v511_v0, %v507_v62  ;;  %v857_v61 = vld [vmem:[#allocation5 + $0x130] sm:$0xff]  ;;  %v860_v62 = vld [vmem:[#allocation5 + $0x148] sm:$0xff] }
  0xba   : > { %v862_v0 = vld [vmem:[#allocation5 + $0x158] sm:$0xff] }
  0xbb   : > { %1606 = vmatpush1.bf16.msra.mxu0 %v1605_v9  ;;  %v823_v9 = vld [vmem:[#allocation5 + $0x20] sm:$0xff] }
  0xbc   : > { %1734 = vmatpush1.bf16.msra.mxu1 %v1733_v10  ;;  %1608 = vmatprep.subr.bf16.mxu0 %v1607_v11  ;;  %v821_v10 = vld [vmem:[#allocation5 + $0x10] sm:$0xff]  ;;  %v1883_v11 = vpack.c.bf16 %v826_v4, %v822_v3  ;;  %v1757_v18 = vpack.c.bf16 %v823_v9, %v819_v8  ;;  %v1903_v8 = vpack.c.bf16 %v866_v1, %v862_v0  ;;  %v899_v1 = vld [vmem:[#allocation5 + $0x280] sm:$0xff] }
  0xbd   : > { %1736 = vmatprep.subr.bf16.mxu1 %v1735_v15  ;;  %v830_v15 = vld [vmem:[#allocation5 + $0x58] sm:$0xff]  ;;  %v1885_v19 = vpack.c.bf16 %v825_v12, %v821_v10  ;;  %v865_v9 = vld [vmem:[#allocation5 + $0x170] sm:$0xff]  ;;  %v868_v10 = vld [vmem:[#allocation5 + $0x188] sm:$0xff] }
  0xbe   : > { %v1887_v24 = vpack.c.bf16 %v834_v16, %v830_v15  ;;  %v870_v12 = vld [vmem:[#allocation5 + $0x198] sm:$0xff] }
  0xbf   : > { %1610 = vmatpush1.bf16.msra.mxu0 %v1609_v21  ;;  %v827_v21 = vld [vmem:[#allocation5 + $0x40] sm:$0xff] }
  0xc0   : > { %1738 = vmatpush1.bf16.msra.mxu1 %v1737_v22  ;;  %1612 = vmatprep.subr.bf16.mxu0 %v1611_v23  ;;  %v831_v22 = vld [vmem:[#allocation5 + $0x60] sm:$0xff]  ;;  %v829_v23 = vld [vmem:[#allocation5 + $0x50] sm:$0xff] }
  0xc1   : > { %1740 = vmatprep.subr.bf16.mxu1 %v1739_v27  ;;  %v840_v27 = vld [vmem:[#allocation5 + $0xa8] sm:$0xff]  ;;  %v1761_v30 = vpack.c.bf16 %v831_v22, %v827_v21  ;;  %v1889_v31 = vpack.c.bf16 %v833_v25, %v829_v23  ;;  %v873_v21 = vld [vmem:[#allocation5 + $0x1b0] sm:$0xff]  ;;  %v882_v25 = vld [vmem:[#allocation5 + $0x1f8] sm:$0xff] }
  0xc2   : > { %v1763_v32 = vpack.c.bf16 %v840_v27, %v836_v26  ;;  %v876_v22 = vld [vmem:[#allocation5 + $0x1c8] sm:$0xff] }
  0xc3   : > { %1614 = vmatpush1.bf16.msra.mxu0 %v1613_v33  ;;  %v835_v33 = vld [vmem:[#allocation5 + $0x80] sm:$0xff]  ;;  %v880_v23 = vld [vmem:[#allocation5 + $0x1e8] sm:$0xff] }
  0xc4   : > { %1742 = vmatpush1.bf16.msra.mxu1 %v1741_v34  ;;  %1616 = vmatprep.subr.bf16.mxu0 %v1615_v35  ;;  %v839_v34 = vld [vmem:[#allocation5 + $0xa0] sm:$0xff]  ;;  %v837_v35 = vld [vmem:[#allocation5 + $0x90] sm:$0xff]  ;;  %v1783_v28 = vpack.c.bf16 %v880_v23, %v876_v22 }
  0xc5   : > { %1744 = vmatprep.subr.bf16.mxu1 %v1743_v39  ;;  %v848_v39 = vld [vmem:[#allocation5 + $0xe8] sm:$0xff]  ;;  %v1765_v42 = vpack.c.bf16 %v839_v34, %v835_v33  ;;  %v1893_v43 = vpack.c.bf16 %v841_v37, %v837_v35  ;;  %v881_v33 = vld [vmem:[#allocation5 + $0x1f0] sm:$0xff]  ;;  %v890_v37 = vld [vmem:[#allocation5 + $0x238] sm:$0xff] }
  0xc6   : > { %v1767_v44 = vpack.c.bf16 %v848_v39, %v844_v38  ;;  %v884_v34 = vld [vmem:[#allocation5 + $0x208] sm:$0xff] }
  0xc7   : > { %1618 = vmatpush1.bf16.msra.mxu0 %v1617_v45  ;;  %v843_v45 = vld [vmem:[#allocation5 + $0xc0] sm:$0xff]  ;;  %v888_v35 = vld [vmem:[#allocation5 + $0x228] sm:$0xff] }
  0xc8   : > { %1746 = vmatpush1.bf16.msra.mxu1 %v1745_v46  ;;  %1620 = vmatprep.subr.bf16.mxu0 %v1619_v47  ;;  %v847_v46 = vld [vmem:[#allocation5 + $0xe0] sm:$0xff]  ;;  %v845_v47 = vld [vmem:[#allocation5 + $0xd0] sm:$0xff]  ;;  %v1787_v40 = vpack.c.bf16 %v888_v35, %v884_v34 }
  0xc9   : > { %1748 = vmatprep.subr.bf16.mxu1 %v1747_v51  ;;  %v856_v51 = vld [vmem:[#allocation5 + $0x128] sm:$0xff]  ;;  %v1769_v54 = vpack.c.bf16 %v847_v46, %v843_v45  ;;  %v1897_v55 = vpack.c.bf16 %v849_v49, %v845_v47  ;;  %v889_v45 = vld [vmem:[#allocation5 + $0x230] sm:$0xff]  ;;  %v898_v49 = vld [vmem:[#allocation5 + $0x278] sm:$0xff] }
  0xca   : > { %v1771_v56 = vpack.c.bf16 %v856_v51, %v852_v50  ;;  %v892_v46 = vld [vmem:[#allocation5 + $0x248] sm:$0xff] }
  0xcb   : > { %1622 = vmatpush1.bf16.msra.mxu0 %v1621_v57  ;;  %v851_v57 = vld [vmem:[#allocation5 + $0x100] sm:$0xff]  ;;  %v896_v47 = vld [vmem:[#allocation5 + $0x268] sm:$0xff] }
  0xcc   : > { %1750 = vmatpush1.bf16.msra.mxu1 %v1749_v58  ;;  %1624 = vmatprep.subr.bf16.mxu0 %v1623_v59  ;;  %v855_v58 = vld [vmem:[#allocation5 + $0x120] sm:$0xff]  ;;  %v853_v59 = vld [vmem:[#allocation5 + $0x110] sm:$0xff]  ;;  %v1791_v52 = vpack.c.bf16 %v896_v47, %v892_v46 }
  0xcd   : > { %1752 = vmatprep.subr.bf16.mxu1 %v1751_v63  ;;  %v864_v63 = vld [vmem:[#allocation5 + $0x168] sm:$0xff]  ;;  %v1773_v2 = vpack.c.bf16 %v855_v58, %v851_v57  ;;  %v1901_v3 = vpack.c.bf16 %v857_v61, %v853_v59  ;;  %v897_v57 = vld [vmem:[#allocation5 + $0x270] sm:$0xff]  ;;  %v906_v61 = vld [vmem:[#allocation5 + $0x2b8] sm:$0xff] }
  0xce   : > { %v1775_v4 = vpack.c.bf16 %v864_v63, %v860_v62  ;;  %v900_v58 = vld [vmem:[#allocation5 + $0x288] sm:$0xff] }
  0xcf   : > { %1626 = vmatpush1.bf16.msra.mxu0 %v1625_v5  ;;  %v859_v5 = vld [vmem:[#allocation5 + $0x140] sm:$0xff]  ;;  %v904_v59 = vld [vmem:[#allocation5 + $0x2a8] sm:$0xff] }
  0xd0   : > { %1754 = vmatpush1.bf16.msra.mxu1 %v1753_v6  ;;  %1756 = vmatprep.subr.bf16.mxu0 %v1755_v7  ;;  %v863_v6 = vld [vmem:[#allocation5 + $0x160] sm:$0xff]  ;;  %v861_v7 = vld [vmem:[#allocation5 + $0x150] sm:$0xff]  ;;  %v1795_v0 = vpack.c.bf16 %v904_v59, %v900_v58  ;;  %v942_v58 = vld [vmem:[#allocation5 + $0x3d8] sm:$0xff] }
  0xd1   : > { %1884 = vmatprep.subr.bf16.mxu1 %v1883_v11  ;;  %v872_v11 = vld [vmem:[#allocation5 + $0x1a8] sm:$0xff]  ;;  %v1777_v14 = vpack.c.bf16 %v863_v6, %v859_v5  ;;  %v1905_v15 = vpack.c.bf16 %v865_v9, %v861_v7  ;;  %v905_v5 = vld [vmem:[#allocation5 + $0x2b0] sm:$0xff]  ;;  %v914_v9 = vld [vmem:[#allocation5 + $0x2f8] sm:$0xff] }
  0xd2   : > { %671 = vmatmul.mubr.f32.vlgmr.msra.gmra.mrb[0].mxu0 %v255_v17  ;;  %v1779_v16 = vpack.c.bf16 %v872_v11, %v868_v10  ;;  %v908_v6 = vld [vmem:[#allocation5 + $0x2c8] sm:$0xff] }
  0xd3   : > { %813 = vmatmul.mubr.f32.vlgmr.msra.gmra.mrb[0].mxu1 %v255_v17  ;;  %1758 = vmatpush1.bf16.msra.mxu0 %v1757_v18  ;;  %v867_v17 = vld [vmem:[#allocation5 + $0x180] sm:$0xff]  ;;  %v912_v7 = vld [vmem:[#allocation5 + $0x2e8] sm:$0xff] }
  0xd4   : > { %1886 = vmatpush1.bf16.msra.mxu1 %v1885_v19  ;;  %1760 = vmatprep.subr.bf16.mxu0 %v1759_v20  ;;  %v871_v18 = vld [vmem:[#allocation5 + $0x1a0] sm:$0xff]  ;;  %v869_v19 = vld [vmem:[#allocation5 + $0x190] sm:$0xff]  ;;  %v1907_v20 = vpack.c.bf16 %v874_v13, %v870_v12  ;;  %v1799_v12 = vpack.c.bf16 %v912_v7, %v908_v6  ;;  %v950_v6 = vld [vmem:[#allocation5 + $0x418] sm:$0xff] }
  0xd5   : > { %1888 = vmatprep.subr.bf16.mxu1 %v1887_v24  ;;  %v878_v24 = vld [vmem:[#allocation5 + $0x1d8] sm:$0xff]  ;;  %v1781_v26 = vpack.c.bf16 %v871_v18, %v867_v17  ;;  %v1909_v27 = vpack.c.bf16 %v873_v21, %v869_v19  ;;  %v907_v13 = vld [vmem:[#allocation5 + $0x2c0] sm:$0xff]  ;;  %v913_v17 = vld [vmem:[#allocation5 + $0x2f0] sm:$0xff] }
  0xd6   : > { %v916_v18 = vld [vmem:[#allocation5 + $0x308] sm:$0xff]  ;;  %v922_v21 = vld [vmem:[#allocation5 + $0x338] sm:$0xff] }
  0xd7   : > { %1762 = vmatpush1.bf16.msra.mxu0 %v1761_v30  ;;  %v879_v30 = vld [vmem:[#allocation5 + $0x1e0] sm:$0xff]  ;;  %v920_v19 = vld [vmem:[#allocation5 + $0x328] sm:$0xff] }
  0xd8   : > { %1890 = vmatpush1.bf16.msra.mxu1 %v1889_v31  ;;  %1764 = vmatprep.subr.bf16.mxu0 %v1763_v32  ;;  %v877_v31 = vld [vmem:[#allocation5 + $0x1d0] sm:$0xff]  ;;  %v1911_v32 = vpack.c.bf16 %v882_v25, %v878_v24  ;;  %v1785_v38 = vpack.c.bf16 %v879_v30, %v875_v29  ;;  %v1803_v24 = vpack.c.bf16 %v920_v19, %v916_v18  ;;  %v915_v25 = vld [vmem:[#allocation5 + $0x300] sm:$0xff]  ;;  %v924_v30 = vld [vmem:[#allocation5 + $0x348] sm:$0xff] }
  0xd9   : > { %1892 = vmatprep.subr.bf16.mxu1 %v1891_v36  ;;  %v886_v36 = vld [vmem:[#allocation5 + $0x218] sm:$0xff]  ;;  %v1913_v39 = vpack.c.bf16 %v881_v33, %v877_v31  ;;  %v921_v29 = vld [vmem:[#allocation5 + $0x330] sm:$0xff]  ;;  %v928_v31 = vld [vmem:[#allocation5 + $0x368] sm:$0xff] }
  0xda   : > { %v930_v33 = vld [vmem:[#allocation5 + $0x378] sm:$0xff]  ;;  %v951_v19 = vld [vmem:[#allocation5 + $0x420] sm:$0xff] }
  0xdb   : > { %1766 = vmatpush1.bf16.msra.mxu0 %v1765_v42  ;;  %v887_v42 = vld [vmem:[#allocation5 + $0x220] sm:$0xff] }
  0xdc   : > { %1894 = vmatpush1.bf16.msra.mxu1 %v1893_v43  ;;  %1768 = vmatprep.subr.bf16.mxu0 %v1767_v44  ;;  %v885_v43 = vld [vmem:[#allocation5 + $0x210] sm:$0xff]  ;;  %v1915_v44 = vpack.c.bf16 %v890_v37, %v886_v36  ;;  %v1789_v50 = vpack.c.bf16 %v887_v42, %v883_v41  ;;  %v1807_v36 = vpack.c.bf16 %v928_v31, %v924_v30  ;;  %v923_v37 = vld [vmem:[#allocation5 + $0x340] sm:$0xff]  ;;  %v932_v42 = vld [vmem:[#allocation5 + $0x388] sm:$0xff] }
  0xdd   : > { %1896 = vmatprep.subr.bf16.mxu1 %v1895_v48  ;;  %v894_v48 = vld [vmem:[#allocation5 + $0x258] sm:$0xff]  ;;  %v1917_v51 = vpack.c.bf16 %v889_v45, %v885_v43  ;;  %v929_v41 = vld [vmem:[#allocation5 + $0x370] sm:$0xff]  ;;  %v936_v43 = vld [vmem:[#allocation5 + $0x3a8] sm:$0xff] }
  0xde   : > { %v938_v45 = vld [vmem:[#allocation5 + $0x3b8] sm:$0xff] }
  0xdf   : > { %1770 = vmatpush1.bf16.msra.mxu0 %v1769_v54  ;;  %v895_v54 = vld [vmem:[#allocation5 + $0x260] sm:$0xff] }
  0xe0   : > { %1898 = vmatpush1.bf16.msra.mxu1 %v1897_v55  ;;  %1772 = vmatprep.subr.bf16.mxu0 %v1771_v56  ;;  %v893_v55 = vld [vmem:[#allocation5 + $0x250] sm:$0xff]  ;;  %v1919_v56 = vpack.c.bf16 %v898_v49, %v894_v48  ;;  %v1793_v62 = vpack.c.bf16 %v895_v54, %v891_v53  ;;  %v1811_v48 = vpack.c.bf16 %v936_v43, %v932_v42  ;;  %v931_v49 = vld [vmem:[#allocation5 + $0x380] sm:$0xff]  ;;  %v968_v42 = vld [vmem:[#allocation5 + $0x4a8] sm:$0xff] }
  0xe1   : > { %1900 = vmatprep.subr.bf16.mxu1 %v1899_v60  ;;  %v902_v60 = vld [vmem:[#allocation5 + $0x298] sm:$0xff]  ;;  %v1921_v63 = vpack.c.bf16 %v897_v57, %v893_v55  ;;  %v937_v53 = vld [vmem:[#allocation5 + $0x3b0] sm:$0xff]  ;;  %v944_v57 = vld [vmem:[#allocation5 + $0x3e8] sm:$0xff] }
  0xe2   : > { %v966_v43 = vld [vmem:[#allocation5 + $0x498] sm:$0xff] }
  0xe3   : > { %1774 = vmatpush1.bf16.msra.mxu0 %v1773_v2  ;;  %v903_v2 = vld [vmem:[#allocation5 + $0x2a0] sm:$0xff] }
  0xe4   : > { %1902 = vmatpush1.bf16.msra.mxu1 %v1901_v3  ;;  %1776 = vmatprep.subr.bf16.mxu0 %v1775_v4  ;;  %v901_v3 = vld [vmem:[#allocation5 + $0x290] sm:$0xff]  ;;  %v1923_v4 = vpack.c.bf16 %v906_v61, %v902_v60  ;;  %v1797_v10 = vpack.c.bf16 %v903_v2, %v899_v1  ;;  %v946_v60 = vld [vmem:[#allocation5 + $0x3f8] sm:$0xff]  ;;  %v939_v61 = vld [vmem:[#allocation5 + $0x3c0] sm:$0xff] }
  0xe5   : > { %1904 = vmatprep.subr.bf16.mxu1 %v1903_v8  ;;  %v910_v8 = vld [vmem:[#allocation5 + $0x2d8] sm:$0xff]  ;;  %v1925_v11 = vpack.c.bf16 %v905_v5, %v901_v3  ;;  %v941_v1 = vld [vmem:[#allocation5 + $0x3d0] sm:$0xff]  ;;  %v952_v5 = vld [vmem:[#allocation5 + $0x428] sm:$0xff] }
  0xe6   : > { %v945_v2 = vld [vmem:[#allocation5 + $0x3f0] sm:$0xff] }
  0xe7   : > { %1778 = vmatpush1.bf16.msra.mxu0 %v1777_v14  ;;  %v911_v14 = vld [vmem:[#allocation5 + $0x2e0] sm:$0xff]  ;;  %v1945_v3 = vpack.c.bf16 %v945_v2, %v941_v1  ;;  %v977_v1 = vld [vmem:[#allocation5 + $0x4f0] sm:$0xff]  ;;  %v980_v2 = vld [vmem:[#allocation5 + $0x508] sm:$0xff] }
  0xe8   : > { %1906 = vmatpush1.bf16.msra.mxu1 %v1905_v15  ;;  %1780 = vmatprep.subr.bf16.mxu0 %v1779_v16  ;;  %v909_v15 = vld [vmem:[#allocation5 + $0x2d0] sm:$0xff]  ;;  %v1927_v16 = vpack.c.bf16 %v914_v9, %v910_v8  ;;  %v1801_v22 = vpack.c.bf16 %v911_v14, %v907_v13  ;;  %v954_v8 = vld [vmem:[#allocation5 + $0x438] sm:$0xff]  ;;  %v2394_v13 = vld [vmem:[%s2470_s2] sm:$0xf] }
  0xe9   : > { %1908 = vmatprep.subr.bf16.mxu1 %v1907_v20  ;;  %v918_v20 = vld [vmem:[#allocation5 + $0x318] sm:$0xff]  ;;  %v1929_v23 = vpack.c.bf16 %v913_v17, %v909_v15  ;;  %v1947_v9 = vpack.c.bf16 %v954_v8, %v950_v6  ;;  %v947_v17 = vld [vmem:[#allocation5 + $0x400] sm:$0xff] }
  0xea   : > { %v979_v8 = vld [vmem:[#allocation5 + $0x500] sm:$0xff] }
  0xeb   : > { %1782 = vmatpush1.bf16.msra.mxu0 %v1781_v26  ;;  %v919_v26 = vld [vmem:[#allocation5 + $0x320] sm:$0xff] }
  0xec   : > { %1910 = vmatpush1.bf16.msra.mxu1 %v1909_v27  ;;  %1784 = vmatprep.subr.bf16.mxu0 %v1783_v28  ;;  %v917_v27 = vld [vmem:[#allocation5 + $0x310] sm:$0xff]  ;;  %v1931_v28 = vpack.c.bf16 %v922_v21, %v918_v20  ;;  %v1805_v34 = vpack.c.bf16 %v919_v26, %v915_v25 }
  0xed   : > { %1912 = vmatprep.subr.bf16.mxu1 %v1911_v32  ;;  %v926_v32 = vld [vmem:[#allocation5 + $0x358] sm:$0xff]  ;;  %v1933_v35 = vpack.c.bf16 %v921_v29, %v917_v27  ;;  %v949_v20 = vld [vmem:[#allocation5 + $0x410] sm:$0xff]  ;;  %v960_v27 = vld [vmem:[#allocation5 + $0x468] sm:$0xff] }
  0xee   : > { %v953_v21 = vld [vmem:[#allocation5 + $0x430] sm:$0xff]  ;;  %v962_v29 = vld [vmem:[#allocation5 + $0x478] sm:$0xff] }
  0xef   : > { %1786 = vmatpush1.bf16.msra.mxu0 %v1785_v38  ;;  %v927_v38 = vld [vmem:[#allocation5 + $0x360] sm:$0xff] }
  0xf0   : > { %1914 = vmatpush1.bf16.msra.mxu1 %v1913_v39  ;;  %1788 = vmatprep.subr.bf16.mxu0 %v1787_v40  ;;  %v925_v39 = vld [vmem:[#allocation5 + $0x350] sm:$0xff]  ;;  %v1935_v40 = vpack.c.bf16 %v930_v33, %v926_v32  ;;  %v1809_v46 = vpack.c.bf16 %v927_v38, %v923_v37  ;;  %v1821_v32 = vpack.c.bf16 %v951_v19, %v947_v17  ;;  %v988_v19 = vld [vmem:[#allocation5 + $0x548] sm:$0xff] }
  0xf1   : > { %1916 = vmatprep.subr.bf16.mxu1 %v1915_v44  ;;  %v934_v44 = vld [vmem:[#allocation5 + $0x398] sm:$0xff]  ;;  %v1937_v47 = vpack.c.bf16 %v929_v41, %v925_v39  ;;  %v1949_v33 = vpack.c.bf16 %v953_v21, %v949_v20  ;;  %v957_v37 = vld [vmem:[#allocation5 + $0x450] sm:$0xff]  ;;  %v964_v39 = vld [vmem:[#allocation5 + $0x488] sm:$0xff] }
  0xf2   : > { %v961_v38 = vld [vmem:[#allocation5 + $0x470] sm:$0xff]  ;;  %v992_v20 = vld [vmem:[#allocation5 + $0x568] sm:$0xff]  ;;  %v990_v21 = vld [vmem:[#allocation5 + $0x558] sm:$0xff] }
  0xf3   : > { %1790 = vmatpush1.bf16.msra.mxu0 %v1789_v50  ;;  %v935_v50 = vld [vmem:[#allocation5 + $0x3a0] sm:$0xff]  ;;  %v981_v17 = vld [vmem:[#allocation5 + $0x510] sm:$0xff] }
  0xf4   : > { %1918 = vmatpush1.bf16.msra.mxu1 %v1917_v51  ;;  %1792 = vmatprep.subr.bf16.mxu0 %v1791_v52  ;;  %v1939_v51 = vpack.c.bf16 %v938_v45, %v934_v44  ;;  %v933_v52 = vld [vmem:[#allocation5 + $0x390] sm:$0xff]  ;;  %v1813_v54 = vpack.c.bf16 %v935_v50, %v931_v49  ;;  %v970_v44 = vld [vmem:[#allocation5 + $0x4b8] sm:$0xff]  ;;  %v967_v49 = vld [vmem:[#allocation5 + $0x4a0] sm:$0xff]  ;;  %v1827_v50 = vpack.c.bf16 %v968_v42, %v964_v39 }
  0xf5   : > { %1920 = vmatprep.subr.bf16.mxu1 %v1919_v56  ;;  %v1941_v55 = vpack.c.bf16 %v937_v53, %v933_v52  ;;  %v940_v56 = vld [vmem:[#allocation5 + $0x3c8] sm:$0xff]  ;;  %v965_v52 = vld [vmem:[#allocation5 + $0x490] sm:$0xff]  ;;  %v999_v39 = vld [vmem:[#allocation5 + $0x5a0] sm:$0xff] }
  0xf6   : > { %v1815_v59 = vpack.c.bf16 %v944_v57, %v940_v56  ;;  %v969_v53 = vld [vmem:[#allocation5 + $0x4b0] sm:$0xff]  ;;  %v974_v56 = vld [vmem:[#allocation5 + $0x4d8] sm:$0xff] }
  0xf7   : > { %1794 = vmatpush1.bf16.msra.mxu0 %v1793_v62  ;;  %v943_v62 = vld [vmem:[#allocation5 + $0x3e0] sm:$0xff]  ;;  %v978_v57 = vld [vmem:[#allocation5 + $0x4f8] sm:$0xff]  ;;  %v997_v42 = vld [vmem:[#allocation5 + $0x590] sm:$0xff] }
  0xf8   : > { %1922 = vmatpush1.bf16.msra.mxu1 %v1921_v63  ;;  %1796 = vmatprep.subr.bf16.mxu0 %v1795_v0  ;;  %v1943_v63 = vpack.c.bf16 %v946_v60, %v942_v58  ;;  %v1817_v0 = vpack.c.bf16 %v943_v62, %v939_v61  ;;  %v971_v60 = vld [vmem:[#allocation5 + $0x4c0] sm:$0xff] }
  0xf9   : > { %1924 = vmatprep.subr.bf16.mxu1 %v1923_v4  ;;  %v948_v4 = vld [vmem:[#allocation5 + $0x408] sm:$0xff]  ;;  %v975_v61 = vld [vmem:[#allocation5 + $0x4e0] sm:$0xff] }
  0xfa   : > { %v1819_v7 = vpack.c.bf16 %v952_v5, %v948_v4  ;;  %v982_v4 = vld [vmem:[#allocation5 + $0x518] sm:$0xff]  ;;  %v1833_v6 = vpack.c.bf16 %v975_v61, %v971_v60 }
  0xfb   : > { %1798 = vmatpush1.bf16.msra.mxu0 %v1797_v10  ;;  %v515_v10 = vlaneseq  ;;  %v986_v5 = vld [vmem:[#allocation5 + $0x538] sm:$0xff] }
  0xfc   : > { %1926 = vmatpush1.bf16.msra.mxu1 %v1925_v11  ;;  %1800 = vmatprep.subr.bf16.mxu0 %v1799_v12 }
  0xfd   : > { %1928 = vmatprep.subr.bf16.mxu1 %v1927_v16  ;;  %v2388_v11 = vshrl.u32 %v515_v10, 7 }
  0xff   : > { %1802 = vmatpush1.bf16.msra.mxu0 %v1801_v22  ;;  %v521_v12 = vsub.s32 1, %v2388_v11  ;;  %v517_v14 = vsub.s32 0, %v2388_v11  ;;  %v529_v15 = vsub.s32 3, %v2388_v11 }
 0x100   : > { %1930 = vmatpush1.bf16.msra.mxu1 %v1929_v23  ;;  %1804 = vmatprep.subr.bf16.mxu0 %v1803_v24  ;;  %v956_v23 = vld [vmem:[#allocation5 + $0x448] sm:$0xff] }
 0x101   : > { %1932 = vmatprep.subr.bf16.mxu1 %v1931_v28  ;;  %v522_v16 = vrot.slane %v2394_v13, %v521_v12  ;;  %v518_v18 = vrot.slane %v2394_v13, %v517_v14  ;;  %v530_v26 = vrot.slane %v2394_v13, %v529_v15  ;;  %v958_v28 = vld [vmem:[#allocation5 + $0x458] sm:$0xff] }
 0x102   : > { %v1951_v41 = vpack.c.bf16 %v962_v29, %v958_v28  ;;  %v1839_v28 = vpack.c.bf16 %v992_v20, %v988_v19  ;;  %v1021_v19 = vld [vmem:[#allocation5 + $0x650] sm:$0xff] }
 0x103   : > { %1806 = vmatpush1.bf16.msra.mxu0 %v1805_v34  ;;  %v955_v34 = vld [vmem:[#allocation5 + $0x440] sm:$0xff]  ;;  %v1025_v20 = vld [vmem:[#allocation5 + $0x670] sm:$0xff] }
 0x104   : > { %1934 = vmatpush1.bf16.msra.mxu1 %v1933_v35  ;;  %1808 = vmatprep.subr.bf16.mxu0 %v1807_v36  ;;  %v959_v35 = vld [vmem:[#allocation5 + $0x460] sm:$0xff] }
 0x105   : > { %1936 = vmatprep.subr.bf16.mxu1 %v1935_v40  ;;  %v1823_v40 = vpack.c.bf16 %v960_v27, %v956_v23  ;;  %v991_v27 = vld [vmem:[#allocation5 + $0x560] sm:$0xff] }
 0x107   : > { %1810 = vmatpush1.bf16.msra.mxu0 %v1809_v46  ;;  %v1825_v46 = vpack.c.bf16 %v959_v35, %v955_v34  ;;  %v998_v34 = vld [vmem:[#allocation5 + $0x598] sm:$0xff] }
 0x108   : > { %1938 = vmatpush1.bf16.msra.mxu1 %v1937_v47  ;;  %1812 = vmatprep.subr.bf16.mxu0 %v1811_v48  ;;  %v1953_v47 = vpack.c.bf16 %v961_v38, %v957_v37  ;;  %v963_v48 = vld [vmem:[#allocation5 + $0x480] sm:$0xff]  ;;  %v1002_v35 = vld [vmem:[#allocation5 + $0x5b8] sm:$0xff] }
 0x109   : > { %1940 = vmatprep.subr.bf16.mxu1 %v1939_v51  ;;  %v1955_v51 = vpack.c.bf16 %v970_v44, %v966_v43  ;;  %v1829_v58 = vpack.c.bf16 %v967_v49, %v963_v48  ;;  %v995_v38 = vld [vmem:[#allocation5 + $0x580] sm:$0xff]  ;;  %v1001_v43 = vld [vmem:[#allocation5 + $0x5b0] sm:$0xff]  ;;  %v1004_v44 = vld [vmem:[#allocation5 + $0x5c8] sm:$0xff] }
 0x10a   : > { %v1845_v48 = vpack.c.bf16 %v999_v39, %v995_v38  ;;  %v1973_v49 = vpack.c.bf16 %v1001_v43, %v997_v42 }
 0x10b   : > { %1814 = vmatpush1.bf16.msra.mxu0 %v1813_v54  ;;  %v972_v54 = vld [vmem:[#allocation5 + $0x4c8] sm:$0xff] }
 0x10c   : > { %1942 = vmatpush1.bf16.msra.mxu1 %v1941_v55  ;;  %1816 = vmatprep.subr.bf16.mxu0 %v1815_v59  ;;  %v976_v55 = vld [vmem:[#allocation5 + $0x4e8] sm:$0xff]  ;;  %v1957_v59 = vpack.c.bf16 %v969_v53, %v965_v52 }
 0x10d   : > { %1944 = vmatprep.subr.bf16.mxu1 %v1943_v63  ;;  %v1831_v62 = vpack.c.bf16 %v976_v55, %v972_v54  ;;  %v1959_v63 = vpack.c.bf16 %v978_v57, %v974_v56  ;;  %v1005_v54 = vld [vmem:[#allocation5 + $0x5d0] sm:$0xff]  ;;  %v1012_v56 = vld [vmem:[#allocation5 + $0x608] sm:$0xff] }
 0x10e   : > { %v1009_v55 = vld [vmem:[#allocation5 + $0x5f0] sm:$0xff]  ;;  %v1016_v57 = vld [vmem:[#allocation5 + $0x628] sm:$0xff] }
 0x10f   : > { %1818 = vmatpush1.bf16.msra.mxu0 %v1817_v0  ;;  %v973_v0 = vld [vmem:[#allocation5 + $0x4d0] sm:$0xff]  ;;  %v1977_v61 = vpack.c.bf16 %v1009_v55, %v1005_v54 }
 0x110   : > { %1946 = vmatpush1.bf16.msra.mxu1 %v1945_v3  ;;  %1820 = vmatprep.subr.bf16.mxu0 %v1819_v7  ;;  %v984_v3 = vld [vmem:[#allocation5 + $0x528] sm:$0xff]  ;;  %v1961_v7 = vpack.c.bf16 %v977_v1, %v973_v0  ;;  %v1851_v0 = vpack.c.bf16 %v1016_v57, %v1012_v56  ;;  %v1045_v56 = vld [vmem:[#allocation5 + $0x710] sm:$0xff] }
 0x111   : > { %1948 = vmatprep.subr.bf16.mxu1 %v1947_v9  ;;  %v983_v9 = vld [vmem:[#allocation5 + $0x520] sm:$0xff]  ;;  %v1835_v10 = vpack.c.bf16 %v984_v3, %v980_v2  ;;  %v1013_v2 = vld [vmem:[#allocation5 + $0x610] sm:$0xff] }
 0x112   : > { %v1837_v23 = vpack.c.bf16 %v983_v9, %v979_v8  ;;  %v1017_v3 = vld [vmem:[#allocation5 + $0x630] sm:$0xff] }
 0x113   : > { %v1981_v9 = vpack.c.bf16 %v1017_v3, %v1013_v2  ;;  %v1049_v57 = vld [vmem:[#allocation5 + $0x730] sm:$0xff] }
 0x1a5   : > { %v672_v22 = vpop.f32.mrb[0].mxu0 }
 0x1a6   : > { %v2404_v24 = vpop.f32.mrb[0].mxu1  ;;  %v674_v25 = vpop.f32.mrb[1].mxu0  ;;  %v2011_v36 = vadd.f32 %v672_v22, %v518_v18  ;;  %v985_v18 = vld [vmem:[#allocation5 + $0x530] sm:$0xff]  ;;  %v994_v22 = vld [vmem:[#allocation5 + $0x578] sm:$0xff] }
 0x1a7   : > { %v2012_v30 = vadd.f32 %v674_v25, %v522_v16  ;;  %v816_v31 = vpop.f32.mrb[1].mxu1  ;;  %v1963_v16 = vpack.c.bf16 %v986_v5, %v982_v4  ;;  %v1965_v25 = vpack.c.bf16 %v985_v18, %v981_v17  ;;  %v1967_v29 = vpack.c.bf16 %v994_v22, %v990_v21  ;;  %v1020_v4 = vld [vmem:[#allocation5 + $0x648] sm:$0xff] }
 0x1a8   : > { %v2014_v45 = vadd.f32 %v816_v31, %v530_v26  ;;  %v987_v26 = vld [vmem:[#allocation5 + $0x540] sm:$0xff]  ;;  %v993_v31 = vld [vmem:[#allocation5 + $0x570] sm:$0xff]  ;;  %v1024_v5 = vld [vmem:[#allocation5 + $0x668] sm:$0xff] }
 0x1a9   : > { %1161 = vmatprep.mubr.f32.mxu0 %v2012_v30  ;;  %1303 = vmatprep.mubr.f32.mxu1 %v2012_v30  ;;  %v989_v30 = vld [vmem:[#allocation5 + $0x550] sm:$0xff]  ;;  %v1855_v17 = vpack.c.bf16 %v1024_v5, %v1020_v4  ;;  %v1028_v21 = vld [vmem:[#allocation5 + $0x688] sm:$0xff] }
 0x1aa   : > { %1162 = vmatmul.mubr.f32.vlgmr.msra.gmra.mrb[2].mxu0 %v2011_v36  ;;  %1304 = vmatmul.mubr.f32.vlgmr.msra.gmra.mrb[2].mxu1 %v2011_v36  ;;  %v1841_v36 = vpack.c.bf16 %v991_v27, %v987_v26  ;;  %v1969_v37 = vpack.c.bf16 %v993_v31, %v989_v30  ;;  %v1032_v22 = vld [vmem:[#allocation5 + $0x6a8] sm:$0xff]  ;;  %v1985_v27 = vpack.c.bf16 %v1025_v20, %v1021_v19  ;;  %v1053_v4 = vld [vmem:[#allocation5 + $0x750] sm:$0xff] }
 0x1ab   : > { %1822 = vmatpush1.bf16.msra.mxu0 %v1821_v32  ;;  %1950 = vmatpush1.bf16.msra.mxu1 %v1949_v33  ;;  %v996_v32 = vld [vmem:[#allocation5 + $0x588] sm:$0xff]  ;;  %v1859_v30 = vpack.c.bf16 %v1032_v22, %v1028_v21  ;;  %v1057_v5 = vld [vmem:[#allocation5 + $0x770] sm:$0xff] }
 0x1ac   : > { %1232 = vmatprep.mubr.f32.mxu0 %v2014_v45  ;;  %1374 = vmatprep.mubr.f32.mxu1 %v2014_v45  ;;  %v1000_v33 = vld [vmem:[#allocation5 + $0x5a8] sm:$0xff]  ;;  %v1061_v21 = vld [vmem:[#allocation5 + $0x790] sm:$0xff] }
 0x1ad   : > { %1824 = vmatprep.subr.bf16.mxu0 %v1823_v40  ;;  %1952 = vmatprep.subr.bf16.mxu1 %v1951_v41  ;;  %v1843_v40 = vpack.c.bf16 %v1000_v33, %v996_v32  ;;  %v1971_v41 = vpack.c.bf16 %v1002_v35, %v998_v34  ;;  %v1008_v45 = vld [vmem:[#allocation5 + $0x5e8] sm:$0xff]  ;;  %v1029_v32 = vld [vmem:[#allocation5 + $0x690] sm:$0xff] }
 0x1ae   : > { %v1847_v52 = vpack.c.bf16 %v1008_v45, %v1004_v44  ;;  %v1033_v33 = vld [vmem:[#allocation5 + $0x6b0] sm:$0xff]  ;;  %v1036_v34 = vld [vmem:[#allocation5 + $0x6c8] sm:$0xff] }
 0x1af   : > { %1826 = vmatpush1.bf16.msra.mxu0 %v1825_v46  ;;  %1954 = vmatpush1.bf16.msra.mxu1 %v1953_v47  ;;  %v1006_v46 = vld [vmem:[#allocation5 + $0x5d8] sm:$0xff]  ;;  %v1040_v35 = vld [vmem:[#allocation5 + $0x6e8] sm:$0xff]  ;;  %v1989_v39 = vpack.c.bf16 %v1033_v33, %v1029_v32  ;;  %v1037_v44 = vld [vmem:[#allocation5 + $0x6d0] sm:$0xff] }
 0x1b0   : > { %1828 = vmatprep.subr.bf16.mxu0 %v1827_v50  ;;  %1956 = vmatprep.subr.bf16.mxu1 %v1955_v51  ;;  %v1010_v47 = vld [vmem:[#allocation5 + $0x5f8] sm:$0xff]  ;;  %v1003_v50 = vld [vmem:[#allocation5 + $0x5c0] sm:$0xff]  ;;  %v1863_v42 = vpack.c.bf16 %v1040_v35, %v1036_v34  ;;  %v1041_v45 = vld [vmem:[#allocation5 + $0x6f0] sm:$0xff] }
 0x1b1   : > { %v1007_v51 = vld [vmem:[#allocation5 + $0x5e0] sm:$0xff]  ;;  %v1975_v53 = vpack.c.bf16 %v1010_v47, %v1006_v46  ;;  %v1044_v46 = vld [vmem:[#allocation5 + $0x708] sm:$0xff]  ;;  %v1065_v22 = vld [vmem:[#allocation5 + $0x7b0] sm:$0xff] }
 0x1b2   : > { %v1849_v60 = vpack.c.bf16 %v1007_v51, %v1003_v50  ;;  %v1048_v47 = vld [vmem:[#allocation5 + $0x728] sm:$0xff]  ;;  %v1993_v51 = vpack.c.bf16 %v1041_v45, %v1037_v44  ;;  %v1071_v34 = vld [vmem:[#allocation5 + $0x7e0] sm:$0xff]  ;;  %v1069_v35 = vld [vmem:[#allocation5 + $0x7d0] sm:$0xff] }
 0x1b3   : > { %1830 = vmatpush1.bf16.msra.mxu0 %v1829_v58  ;;  %1958 = vmatpush1.bf16.msra.mxu1 %v1957_v59  ;;  %v1014_v58 = vld [vmem:[#allocation5 + $0x618] sm:$0xff]  ;;  %v1867_v54 = vpack.c.bf16 %v1048_v47, %v1044_v46 }
 0x1b4   : > { %1832 = vmatprep.subr.bf16.mxu0 %v1831_v62  ;;  %1960 = vmatprep.subr.bf16.mxu1 %v1959_v63  ;;  %v1018_v59 = vld [vmem:[#allocation5 + $0x638] sm:$0xff]  ;;  %v1011_v62 = vld [vmem:[#allocation5 + $0x600] sm:$0xff] }
 0x1b5   : > { %v1015_v63 = vld [vmem:[#allocation5 + $0x620] sm:$0xff]  ;;  %v1979_v1 = vpack.c.bf16 %v1018_v59, %v1014_v58  ;;  %v1052_v58 = vld [vmem:[#allocation5 + $0x748] sm:$0xff] }
 0x1b6   : > { %v1853_v8 = vpack.c.bf16 %v1015_v63, %v1011_v62  ;;  %v1056_v59 = vld [vmem:[#allocation5 + $0x768] sm:$0xff]  ;;  %v1997_v63 = vpack.c.bf16 %v1049_v57, %v1045_v56 }
 0x1b7   : > { %1834 = vmatpush1.bf16.msra.mxu0 %v1833_v6  ;;  %1962 = vmatpush1.bf16.msra.mxu1 %v1961_v7  ;;  %v1022_v6 = vld [vmem:[#allocation5 + $0x658] sm:$0xff]  ;;  %v1871_v2 = vpack.c.bf16 %v1056_v59, %v1052_v58 }
 0x1b8   : > { %1836 = vmatprep.subr.bf16.mxu0 %v1835_v10  ;;  %1964 = vmatprep.subr.bf16.mxu1 %v1963_v16  ;;  %v1026_v7 = vld [vmem:[#allocation5 + $0x678] sm:$0xff]  ;;  %v1019_v10 = vld [vmem:[#allocation5 + $0x640] sm:$0xff] }
 0x1b9   : > { %v1023_v16 = vld [vmem:[#allocation5 + $0x660] sm:$0xff]  ;;  %v1983_v18 = vpack.c.bf16 %v1026_v7, %v1022_v6  ;;  %v1060_v6 = vld [vmem:[#allocation5 + $0x788] sm:$0xff] }
 0x1ba   : > { %v1857_v26 = vpack.c.bf16 %v1023_v16, %v1019_v10  ;;  %v1064_v7 = vld [vmem:[#allocation5 + $0x7a8] sm:$0xff]  ;;  %v2001_v16 = vpack.c.bf16 %v1057_v5, %v1053_v4 }
 0x1bb   : > { %1838 = vmatpush1.bf16.msra.mxu0 %v1837_v23  ;;  %1966 = vmatpush1.bf16.msra.mxu1 %v1965_v25  ;;  %v1030_v23 = vld [vmem:[#allocation5 + $0x698] sm:$0xff]  ;;  %v1875_v19 = vpack.c.bf16 %v1064_v7, %v1060_v6 }
 0x1bc   : > { %1840 = vmatprep.subr.bf16.mxu0 %v1839_v28  ;;  %1968 = vmatprep.subr.bf16.mxu1 %v1967_v29  ;;  %v1034_v25 = vld [vmem:[#allocation5 + $0x6b8] sm:$0xff]  ;;  %v1027_v28 = vld [vmem:[#allocation5 + $0x680] sm:$0xff] }
 0x1bd   : > { %v1031_v29 = vld [vmem:[#allocation5 + $0x6a0] sm:$0xff]  ;;  %v1987_v31 = vpack.c.bf16 %v1034_v25, %v1030_v23  ;;  %v1068_v23 = vld [vmem:[#allocation5 + $0x7c8] sm:$0xff] }
 0x1be   : > { %v1861_v38 = vpack.c.bf16 %v1031_v29, %v1027_v28  ;;  %v1072_v25 = vld [vmem:[#allocation5 + $0x7e8] sm:$0xff]  ;;  %v2005_v29 = vpack.c.bf16 %v1065_v22, %v1061_v21 }
 0x1bf   : > { %1842 = vmatpush1.bf16.msra.mxu0 %v1841_v36  ;;  %1970 = vmatpush1.bf16.msra.mxu1 %v1969_v37  ;;  %v1038_v36 = vld [vmem:[#allocation5 + $0x6d8] sm:$0xff]  ;;  %v1879_v32 = vpack.c.bf16 %v1072_v25, %v1068_v23 }
 0x1c0   : > { %1844 = vmatprep.subr.bf16.mxu0 %v1843_v40  ;;  %1972 = vmatprep.subr.bf16.mxu1 %v1971_v41  ;;  %v1042_v37 = vld [vmem:[#allocation5 + $0x6f8] sm:$0xff]  ;;  %v1035_v40 = vld [vmem:[#allocation5 + $0x6c0] sm:$0xff] }
 0x1c1   : > { %v1039_v41 = vld [vmem:[#allocation5 + $0x6e0] sm:$0xff]  ;;  %v1991_v43 = vpack.c.bf16 %v1042_v37, %v1038_v36  ;;  %v1073_v36 = vld [vmem:[#allocation5 + $0x7f0] sm:$0xff] }
 0x1c2   : > { %v1865_v50 = vpack.c.bf16 %v1039_v41, %v1035_v40  ;;  %v1075_v41 = vld [vmem:[%s2472_s4] sm:$0xf] }
 0x1c3   : > { %1846 = vmatpush1.bf16.msra.mxu0 %v1845_v48  ;;  %1974 = vmatpush1.bf16.msra.mxu1 %v1973_v49  ;;  %v1046_v48 = vld [vmem:[#allocation5 + $0x718] sm:$0xff]  ;;  %v1092_v44 = vrot.slane %v1075_v41, %v529_v15 }
 0x1c4   : > { %1848 = vmatprep.subr.bf16.mxu0 %v1847_v52  ;;  %1976 = vmatprep.subr.bf16.mxu1 %v1975_v53  ;;  %v1050_v49 = vld [vmem:[#allocation5 + $0x738] sm:$0xff]  ;;  %v1043_v52 = vld [vmem:[#allocation5 + $0x700] sm:$0xff] }
 0x1c5   : > { %v1047_v53 = vld [vmem:[#allocation5 + $0x720] sm:$0xff]  ;;  %v1995_v55 = vpack.c.bf16 %v1050_v49, %v1046_v48 }
 0x1c6   : > { %v1869_v62 = vpack.c.bf16 %v1047_v53, %v1043_v52 }
 0x1c7   : > { %1850 = vmatpush1.bf16.msra.mxu0 %v1849_v60  ;;  %1978 = vmatpush1.bf16.msra.mxu1 %v1977_v61  ;;  %v1054_v60 = vld [vmem:[#allocation5 + $0x758] sm:$0xff] }
 0x1c8   : > { %1852 = vmatprep.subr.bf16.mxu0 %v1851_v0  ;;  %1980 = vmatprep.subr.bf16.mxu1 %v1979_v1  ;;  %v1058_v61 = vld [vmem:[#allocation5 + $0x778] sm:$0xff]  ;;  %v1051_v0 = vld [vmem:[#allocation5 + $0x740] sm:$0xff] }
 0x1c9   : > { %v1055_v1 = vld [vmem:[#allocation5 + $0x760] sm:$0xff]  ;;  %v1999_v3 = vpack.c.bf16 %v1058_v61, %v1054_v60 }
 0x1ca   : > { %v1873_v10 = vpack.c.bf16 %v1055_v1, %v1051_v0 }
 0x1cb   : > { %1854 = vmatpush1.bf16.msra.mxu0 %v1853_v8  ;;  %1982 = vmatpush1.bf16.msra.mxu1 %v1981_v9  ;;  %v1062_v8 = vld [vmem:[#allocation5 + $0x798] sm:$0xff] }
 0x1cc   : > { %1856 = vmatprep.subr.bf16.mxu0 %v1855_v17  ;;  %1984 = vmatprep.subr.bf16.mxu1 %v1983_v18  ;;  %v1066_v9 = vld [vmem:[#allocation5 + $0x7b8] sm:$0xff]  ;;  %v1059_v17 = vld [vmem:[#allocation5 + $0x780] sm:$0xff] }
 0x1cd   : > { %v1063_v18 = vld [vmem:[#allocation5 + $0x7a0] sm:$0xff]  ;;  %v2003_v20 = vpack.c.bf16 %v1066_v9, %v1062_v8 }
 0x1ce   : > { %v1877_v28 = vpack.c.bf16 %v1063_v18, %v1059_v17 }
 0x1cf   : > { %1858 = vmatpush1.bf16.msra.mxu0 %v1857_v26  ;;  %1986 = vmatpush1.bf16.msra.mxu1 %v1985_v27  ;;  %v1070_v26 = vld [vmem:[#allocation5 + $0x7d8] sm:$0xff] }
 0x1d0   : > { %1860 = vmatprep.subr.bf16.mxu0 %v1859_v30  ;;  %1988 = vmatprep.subr.bf16.mxu1 %v1987_v31  ;;  %v1074_v27 = vld [vmem:[#allocation5 + $0x7f8] sm:$0xff]  ;;  %v1067_v30 = vld [vmem:[#allocation5 + $0x7c0] sm:$0xff]  ;;  %v525_v31 = vsub.s32 2, %v2388_v11 }
 0x1d1   : > { %v2007_v33 = vpack.c.bf16 %v1074_v27, %v1070_v26  ;;  %v1881_v37 = vpack.c.bf16 %v1071_v34, %v1067_v30 }
 0x1d3   : > { %1862 = vmatpush1.bf16.msra.mxu0 %v1861_v38  ;;  %1990 = vmatpush1.bf16.msra.mxu1 %v1989_v39  ;;  %v2009_v38 = vpack.c.bf16 %v1073_v36, %v1069_v35  ;;  %v526_v39 = vrot.slane %v2394_v13, %v525_v31  ;;  %v1084_v13 = vrot.slane %v1075_v41, %v521_v12 }
 0x1d4   : > { %1864 = vmatprep.subr.bf16.mxu0 %v1863_v42  ;;  %1992 = vmatprep.subr.bf16.mxu1 %v1991_v43  ;;  %v1080_v42 = vrot.slane %v1075_v41, %v517_v14  ;;  %v1088_v43 = vrot.slane %v1075_v41, %v525_v31 }
 0x1d5   : > { %v2013_v40 = vadd.f32 %v2404_v24, %v526_v39 }
 0x1d7   : > { %1866 = vmatpush1.bf16.msra.mxu0 %v1865_v50  ;;  %1994 = vmatpush1.bf16.msra.mxu1 %v1993_v51 }
 0x1d8   : > { %1868 = vmatprep.subr.bf16.mxu0 %v1867_v54  ;;  %1996 = vmatprep.subr.bf16.mxu1 %v1995_v55 }
 0x1db   : > { %1870 = vmatpush1.bf16.msra.mxu0 %v1869_v62  ;;  %1998 = vmatpush1.bf16.msra.mxu1 %v1997_v63 }
 0x1dc   : > { %1872 = vmatprep.subr.bf16.mxu0 %v1871_v2  ;;  %2000 = vmatprep.subr.bf16.mxu1 %v1999_v3 }
 0x1df   : > { %1874 = vmatpush1.bf16.msra.mxu0 %v1873_v10  ;;  %2002 = vmatpush1.bf16.msra.mxu1 %v2001_v16 }
 0x1e0   : > { %1876 = vmatprep.subr.bf16.mxu0 %v1875_v19  ;;  %2004 = vmatprep.subr.bf16.mxu1 %v2003_v20 }
 0x1e3   : > { %1878 = vmatpush1.bf16.msra.mxu0 %v1877_v28  ;;  %2006 = vmatpush1.bf16.msra.mxu1 %v2005_v29 }
 0x1e4   : > { %1880 = vmatprep.subr.bf16.mxu0 %v1879_v32  ;;  %2008 = vmatprep.subr.bf16.mxu1 %v2007_v33 }
 0x1e7   : > { %1882 = vmatpush1.bf16.msra.mxu0 %v1881_v37  ;;  %2010 = vmatpush1.bf16.msra.mxu1 %v2009_v38 }
 0x1ea   : > { %1233 = vmatmul.mubr.f32.vlgmr.msra.gmra.mrb[2].mxu0 %v2013_v40  ;;  %1375 = vmatmul.mubr.f32.vlgmr.msra.gmra.mrb[2].mxu1 %v2013_v40 }
 0x2bd   : > { %v1234_v24 = vpop.f32.mrb[2].mxu0  ;;  %v1376_v45 = vpop.f32.mrb[2].mxu1 }
 0x2be   : > { %v2015_v46 = vadd.f32 %v1234_v24, %v1080_v42  ;;  %v2017_v47 = vadd.f32 %v1376_v45, %v1088_v43  ;;  %v1236_v48 = vpop.f32.mrb[3].mxu0  ;;  %v1378_v49 = vpop.f32.mrb[3].mxu1 }
 0x2bf   : > { %v2016_v50 = vadd.f32 %v1236_v48, %v1084_v13  ;;  %v2018_v51 = vadd.f32 %v1378_v49, %v1092_v44 }
 0x2c0   : > { %1381 = vst [vmem:[%s247_s17] sm:$0xff] %v2015_v46  ;;  %1383 = vst [vmem:[%s247_s17 + $0x10] sm:$0xff] %v2017_v47 }
 0x2c1   : > { %1382 = vst [vmem:[%s247_s17 + $0x8] sm:$0xff] %v2016_v50  ;;  %1384 = vst [vmem:[%s247_s17 + $0x18] sm:$0xff] %v2018_v51 }
 0x2c2   : > { %2158 = shalt.err (!%p2155_p11)
}
 0x2c3   : > { %s2159_s9 = scalar_lea.hbm %s2426_s30, 512  ;;  %s2163_s13 = scalar_lea.hbm %s2473_s5, 1024 }
 0x2c4   : > { %p2160_p13 = scmp.ne.s32.totalorder %s2426_s30, %s2159_s9  ;;  %p2164_p6 = scmp.lt.u32.totalorder %s2426_s30, %s2473_s5 }
 0x2c5   : > { %p2165_p9 = scmp.lt.u32.totalorder %s2163_s13, %s2159_s9  ;;  %p2167_p10 = scmp.lt.u32.totalorder %s2159_s9, %s2426_s30 }
 0x2c6   : > { %p2161_p5 = pnand %p2160_p13, %p2486_p1 }
 0x2c7   : > { %p2166_p12 = por %p2165_p9, %p2164_p6 }
 0x2c8   : > { %p2162_p0 = pneg %p2161_p5 }
 0x2c9   : > { %p2168_p2 = por %p2167_p10, %p2166_p12 }
 0x2cb   : > { %p2169_p3 = pnand %p2168_p2, %p2162_p0 }
 0x2cd   : > { %2172 = shalt.err (!%p2169_p3)
}
 0x2ce   : > { %2035 = dma.vmem_to_hbm [thread:$0]  (%p2486_p1), %s2428_s7, 512, %s2426_s30, %s1386_s22  }
 0x2cf PF: > { %p2052_p4 = scmp.ge.s32.totalorder %s2215_s21, 2  ;;  %s1412_s16 = sand.u32 1, %s2203_s18  }
 0x2d0   : > { %p2487_p7 = scmp.ne.s32.totalorder %s2478_s29, 0  ;;  %s1413_s17 = scalar_lea.sflag [#allocation4], %s1412_s16 }
 0x2d2   : > { %p2045_p8 = pnand %p2052_p4, %p2487_p7 }
 0x2d4   : > { %2198 = dma.done.wait (!%p2045_p8), %s1413_s17, 512  }
 0x2d5   : > { %2200 = vsyncadd (!%p2045_p8), %s1413_s17, 4294966784  ;;  %p17_p11 = scmp.ge.s32.totalorder %s2277_s24, 4   ;;  %s2488_s18 = smov %s2207_s19 }
 0x2d6   : > { %s2489_s19 = smov %s2211_s20  ;;  %s2490_s20 = smov %s2288_s27 }
 0x2d7   : > { %s2491_s21 = smov %s2277_s24  ;;  %19 = sbr.rel (!%p17_p11) target bundleno = 5 (0x5), region = 84 }
 0x2de   :  { %1418 = vsyncpa [#allocation3], 1 }
 0x2df   :  { %1420 = vsyncpa [#allocation3 + $0x1], 1 }
 0x2e0   :  { %1421 = vsyncpa [#allocation6], 1 }
 0x2e1   :  { %1422 = vsyncpa [#allocation4], 1 }
 0x2e2   :  { %1424 = vsyncpa [#allocation4 + $0x1], 1 }

</bundles_post_ra>
